<compile_context>
chip_gen: v6e
topology: v6e:2x2x1
jax: 0.10.0
libtpu: 0.0.40
codegen_flags: <defaults>
</compile_context>

<pallas_src>
import functools

import jax
import jax.numpy as jnp
from jax.experimental import pallas as pl
from jax.experimental.pallas import tpu as pltpu

NEG_SLOPE = 0.01   # nn.LeakyReLU default
BN_EPS = 1e-5      # nn.BatchNorm2d default


def conv_pool_block(x, weight, bias, gamma, beta, *, matmul_dtype=jnp.float32):
    """x: (N, Cin, H, W) f32; weight: (Cout, Cin, K, K); bias/gamma/beta: (Cout,).

    `bias` is accepted for API parity with the PyTorch module but not used:
    max(y+b) == max(y)+b per channel, and train-mode BatchNorm subtracts the
    per-channel batch mean, cancelling the bias exactly.
    """
    del bias
    N, Cin, H, W = x.shape
    Cout, Cin2, K, K2 = weight.shape
    assert Cin2 == Cin and K == K2 and K % 2 == 1, "expects square odd kernel"
    pad = K // 2
    assert H % 2 == 0 and W % 2 == 0, "MaxPool2d(2,2) needs even H, W"
    Ho, Wo = H // 2, W // 2
    Hp, Wp = H + 2 * pad, W + 2 * pad

    # ---- row-tile choice: T pooled rows per grid step; 2T conv rows per step.
    # 2T must be a sublane multiple (8) for the input BlockSpec.
    T = 4
    assert Ho % T == 0, "TODO(synk): ragged row tiles (Ho % 4 != 0) not supported yet"
    G = Ho // T

    NWP = N * Wp                 # lane extent of one padded input / conv-output row
    NWO = N * Wo                 # lane extent of one pooled output row
    NWPP = NWP + (K - 1)         # + zero lanes so the kw-shifted slices never run off the end
    KKC = K * K * Cin            # contraction dim of the conv matmul
    L = T * NWO                  # pooled lanes written per grid step
    inv_count = 1.0 / float(N * Ho * Wo)

    # ---------------- host / XLA glue (cheap: ~1x copies, no K*K expansion) --------
    xp = jnp.pad(x, ((0, 0), (0, 0), (pad, pad), (pad, pad)), mode="reflect")
    # lane-dense layout: (Cin, Hp, N*Wp [+K-1 zero lanes]); lanes = flat (n, wp).
    xr = xp.transpose(1, 2, 0, 3).reshape(Cin, Hp, NWP).astype(matmul_dtype)
    xr = jnp.pad(xr, ((0, 0), (0, 0), (0, K - 1)))
    # 2-row halo needed by each row tile (first two padded rows past the tile).
    xh = jnp.stack(
        [xr[:, 2 * T * (g + 1):2 * T * (g + 1) + 2, :] for g in range(G)], axis=0
    )  # (G, Cin, 2, NWPP)

    # weight in (kh, kw, ci) contraction order, matching the in-kernel patch build.
    wmat = weight.transpose(0, 2, 3, 1).reshape(Cout, KKC).astype(matmul_dtype)

    # One-hot selection matrix: column (d*NWO + n*Wo + wo) picks conv column
    # (n*Wp + 2*wo + d).  Used as a tiny f32 matmul to do the stride-2 W-pool
    # compaction on the (otherwise idle) MXU; values pass through exactly.
    n_row = jnp.repeat(jnp.arange(N), Wp)
    wp_row = jnp.tile(jnp.arange(Wp), N)
    n_col = jnp.repeat(jnp.arange(N), Wo)
    wo_col = jnp.tile(jnp.arange(Wo), N)
    sel_halves = []
    for d in range(2):
        sel_halves.append(
            (n_row[:, None] == n_col[None, :])
            & (wp_row[:, None] == 2 * wo_col[None, :] + d)
        )
    sel = jnp.concatenate(sel_halves, axis=1).astype(jnp.float32)  # (NWP, 2*NWO)

    # ---------------- kernel 1: conv + 2x2 max-pool + partial BN stats -------------
    def conv_pool_stats_kernel(x_ref, halo_ref, w_ref, sel_ref, pooled_ref, stats_ref):
        # Row window for this tile: 2T conv rows + 2 halo rows.
        xwin = jnp.concatenate([x_ref[...], halo_ref[0]], axis=1)   # (Cin, 2T+2, NWPP)
        w = w_ref[...]                                              # (Cout, KKC)
        selm = sel_ref[...]                                         # (NWP, 2*NWO) f32

        pooled_rows = []
        for p in range(T):
            conv_rows = []
            for dh in range(2):
                hl = 2 * p + dh
                # in-kernel im2col: (K*K*Cin, NWP) patch from static slices of xwin.
                pieces = [
                    xwin[:, hl + kh, kw:kw + NWP]
                    for kh in range(K) for kw in range(K)
                ]
                patch = jnp.concatenate(pieces, axis=0)
                conv_rows.append(
                    jnp.dot(w, patch, preferred_element_type=jnp.float32)
                )                                                   # (Cout, NWP) f32
            ymax = jnp.maximum(conv_rows[0], conv_rows[1])          # pool over H
            psel = jnp.dot(ymax, selm, preferred_element_type=jnp.float32)
            pooled_rows.append(jnp.maximum(psel[:, :NWO], psel[:, NWO:]))  # pool over W
        pooled = jnp.concatenate(pooled_rows, axis=1)               # (Cout, T*NWO) f32
        pooled_ref[0] = pooled

        # per-tile partial BatchNorm statistics (finalized outside; keeps the grid
        # axis 'parallel' so both v7x TensorCores can split the spatial work).
        s1 = jnp.sum(pooled, axis=1, keepdims=True)
        s2 = jnp.sum(pooled * pooled, axis=1, keepdims=True)
        stats_ref[0] = jnp.concatenate([s1, s2], axis=1)            # (Cout, 2)

    pooled_parts, stats_parts = pl.pallas_call(
        conv_pool_stats_kernel,
        out_shape=(
            jax.ShapeDtypeStruct((G, Cout, L), jnp.float32),
            jax.ShapeDtypeStruct((G, Cout, 2), jnp.float32),
        ),
        grid=(G,),
        in_specs=[
            pl.BlockSpec((Cin, 2 * T, NWPP), lambda g: (0, g, 0)),   # input row tile
            pl.BlockSpec((1, Cin, 2, NWPP), lambda g: (g, 0, 0, 0)),  # 2-row halo
            pl.BlockSpec((Cout, KKC), lambda g: (0, 0)),              # weights (resident)
            pl.BlockSpec((NWP, 2 * NWO), lambda g: (0, 0)),           # pool selector (resident)
        ],
        out_specs=(
            pl.BlockSpec((1, Cout, L), lambda g: (g, 0, 0)),
            pl.BlockSpec((1, Cout, 2), lambda g: (g, 0, 0)),
        ),
        compiler_params=pltpu.CompilerParams(dimension_semantics=("parallel",)),
    )(xr, xh, wmat, sel)

    # ---- finalize pass: reduce the tiny per-tile partials (G x Cout x 2) in XLA and
    # merge gamma/beta/sum/sumsq into one resident (Cout, 4) per-channel input.
    stats_tot = jnp.sum(stats_parts, axis=0)                         # (Cout, 2)
    params = jnp.concatenate(
        [gamma.reshape(Cout, 1), beta.reshape(Cout, 1), stats_tot], axis=1
    ).astype(jnp.float32)                                            # (Cout, 4)

    # ---------------- kernel 2: BatchNorm (batch stats) + LeakyReLU ----------------
    def bn_act_kernel(pooled_ref, params_ref, out_ref):
        po = pooled_ref[0]                                           # (Cout, L) f32
        prm = params_ref[...]                                        # (Cout, 4)
        gam, bet = prm[:, 0:1], prm[:, 1:2]
        mean = prm[:, 2:3] * inv_count
        var = prm[:, 3:4] * inv_count - mean * mean
        var = jnp.maximum(var, 0.0)                                  # cancellation guard
        scale = gam * jax.lax.rsqrt(var + BN_EPS)                    # EUP rsqrt
        shift = bet - mean * scale
        z = po * scale + shift
        out_ref[0] = jnp.maximum(z, NEG_SLOPE * z)                   # LeakyReLU

    y_parts = pl.pallas_call(
        bn_act_kernel,
        out_shape=jax.ShapeDtypeStruct((G, Cout, L), jnp.float32),
        grid=(G,),
        in_specs=[
            pl.BlockSpec((1, Cout, L), lambda g: (g, 0, 0)),
            pl.BlockSpec((Cout, 4), lambda g: (0, 0)),               # resident params
        ],
        out_specs=pl.BlockSpec((1, Cout, L), lambda g: (g, 0, 0)),
        compiler_params=pltpu.CompilerParams(dimension_semantics=("parallel",)),
    )(pooled_parts, params)

    # (G, Cout, T, N, Wo) -> NCHW.  Kept only for API parity with the PyTorch module;
    # a channels-last / (Cout, ...) consumer could take y_parts directly.
    out = (
        y_parts.reshape(G, Cout, T, N, Wo)
        .transpose(3, 1, 0, 2, 4)
        .reshape(N, Cout, Ho, Wo)
    )
    return out


def reference(x, weight, bias, gamma, beta):
    """Pure-JAX reference matching the PyTorch forward (train-mode BN)."""
    pad = weight.shape[-1] // 2
    xp = jnp.pad(x, ((0, 0), (0, 0), (pad, pad), (pad, pad)), mode="reflect")
    y = jax.lax.conv_general_dilated(
        xp, weight, (1, 1), "VALID", dimension_numbers=("NCHW", "OIHW", "NCHW"))
    y = y + bias.reshape(1, -1, 1, 1)
    y = jax.lax.reduce_window(y, -jnp.inf, jax.lax.max, (1, 1, 2, 2), (1, 1, 2, 2), "VALID")
    mean = jnp.mean(y, axis=(0, 2, 3), keepdims=True)
    var = jnp.mean((y - mean) ** 2, axis=(0, 2, 3), keepdims=True)
    z = (y - mean) * jax.lax.rsqrt(var + BN_EPS)
    z = z * gamma.reshape(1, -1, 1, 1) + beta.reshape(1, -1, 1, 1)
    return jnp.where(z >= 0.0, z, NEG_SLOPE * z)


if __name__ == "__main__":
    # ConvPoolBlock(in_channels=4, out_channels=8, kernel_size=3, padding=1,
    #               padding_mode='reflect')
    N, Cin, H, W = 2, 4, 16, 16
    Cout, K = 8, 3

    key = jax.random.PRNGKey(0)
    kx, kw, kb, kg, kbe = jax.random.split(key, 5)
    x = jax.random.normal(kx, (N, Cin, H, W), dtype=jnp.float32)
    bound = 1.0 / jnp.sqrt(Cin * K * K)
    weight = jax.random.uniform(kw, (Cout, Cin, K, K), jnp.float32, -bound, bound)
    bias = jax.random.uniform(kb, (Cout,), jnp.float32, -bound, bound)
    # non-trivial affine params to exercise the BN scale/shift path
    gamma = jax.random.uniform(kg, (Cout,), jnp.float32, 0.5, 1.5)
    beta = 0.1 * jax.random.normal(kbe, (Cout,), dtype=jnp.float32)

    fwd = jax.jit(functools.partial(conv_pool_block, matmul_dtype=jnp.float32))
    out = jax.block_until_ready(fwd(x, weight, bias, gamma, beta))

    ref = jax.block_until_ready(reference(x, weight, bias, gamma, beta))
    assert out.shape == (N, Cout, H // 2, W // 2), out.shape
    assert jnp.allclose(out, ref, atol=1e-3, rtol=1e-3), float(jnp.max(jnp.abs(out - ref)))

    print("KERNEL_OK")
</pallas_src>

<mosaic_0001>
module attributes {stable_mosaic.version = 11 : i64} {
  func.func @conv_pool_stats_kernel(%arg0: i32, %arg1: memref<4x8x38xf32, #tpu.memory_space<vmem>>, %arg2: memref<1x4x2x38xf32, #tpu.memory_space<vmem>>, %arg3: memref<8x36xf32, #tpu.memory_space<vmem>>, %arg4: memref<36x32xf32, #tpu.memory_space<vmem>>, %arg5: memref<1x8x64xf32, #tpu.memory_space<vmem>>, %arg6: memref<1x8x2xf32, #tpu.memory_space<vmem>>) attributes {dimension_semantics = [#tpu.dimension_semantics<parallel>], iteration_bounds = array<i64: 2>, scalar_prefetch = 0 : i64, scratch_operands = 0 : i64, tpu.core_type = #tpu.core_type<tc>, window_params = [{transform_indices = @transform_0, window_bounds = array<i64: 4, 8, 38>}, {transform_indices = @transform_1, window_bounds = array<i64: 1, 4, 2, 38>}, {pipeline_mode = #tpu.pipeline_mode<synchronous>, transform_indices = @transform_2, window_bounds = array<i64: 8, 36>}, {pipeline_mode = #tpu.pipeline_mode<synchronous>, transform_indices = @transform_3, window_bounds = array<i64: 36, 32>}, {transform_indices = @transform_4, window_bounds = array<i64: 1, 8, 64>}, {transform_indices = @transform_5, window_bounds = array<i64: 1, 8, 2>}]} {
    %c0 = arith.constant 0 : index
    %c0_0 = arith.constant 0 : index
    %c0_1 = arith.constant 0 : index
    %0 = vector.load %arg1[%c0, %c0_0, %c0_1] : memref<4x8x38xf32, #tpu.memory_space<vmem>>, vector<4x8x38xf32>
    %c0_2 = arith.constant 0 : index
    %c0_3 = arith.constant 0 : index
    %c0_4 = arith.constant 0 : index
    %c0_5 = arith.constant 0 : index
    %1 = vector.load %arg2[%c0_2, %c0_3, %c0_4, %c0_5] : memref<1x4x2x38xf32, #tpu.memory_space<vmem>>, vector<1x4x2x38xf32>
    %2 = vector.shape_cast %1 : vector<1x4x2x38xf32> to vector<4x2x38xf32>
    %3 = tpu.concatenate %0, %2 in 1 : vector<4x8x38xf32>, vector<4x2x38xf32> -> vector<4x10x38xf32>
    %c0_6 = arith.constant 0 : index
    %c0_7 = arith.constant 0 : index
    %4 = vector.load %arg3[%c0_6, %c0_7] : memref<8x36xf32, #tpu.memory_space<vmem>>, vector<8x36xf32>
    %c0_8 = arith.constant 0 : index
    %c0_9 = arith.constant 0 : index
    %5 = vector.load %arg4[%c0_8, %c0_9] : memref<36x32xf32, #tpu.memory_space<vmem>>, vector<36x32xf32>
    %6 = vector.extract_strided_slice %3 {offsets = [0, 0, 0], sizes = [4, 1, 36], strides = [1, 1, 1]} : vector<4x10x38xf32> to vector<4x1x36xf32>
    %7 = vector.shape_cast %6 : vector<4x1x36xf32> to vector<4x36xf32>
    %8 = vector.extract_strided_slice %3 {offsets = [0, 0, 1], sizes = [4, 1, 36], strides = [1, 1, 1]} : vector<4x10x38xf32> to vector<4x1x36xf32>
    %9 = vector.shape_cast %8 : vector<4x1x36xf32> to vector<4x36xf32>
    %10 = vector.extract_strided_slice %3 {offsets = [0, 0, 2], sizes = [4, 1, 36], strides = [1, 1, 1]} : vector<4x10x38xf32> to vector<4x1x36xf32>
    %11 = vector.shape_cast %10 : vector<4x1x36xf32> to vector<4x36xf32>
    %12 = vector.extract_strided_slice %3 {offsets = [0, 1, 0], sizes = [4, 1, 36], strides = [1, 1, 1]} : vector<4x10x38xf32> to vector<4x1x36xf32>
    %13 = vector.shape_cast %12 : vector<4x1x36xf32> to vector<4x36xf32>
    %14 = vector.extract_strided_slice %3 {offsets = [0, 1, 1], sizes = [4, 1, 36], strides = [1, 1, 1]} : vector<4x10x38xf32> to vector<4x1x36xf32>
    %15 = vector.shape_cast %14 : vector<4x1x36xf32> to vector<4x36xf32>
    %16 = vector.extract_strided_slice %3 {offsets = [0, 1, 2], sizes = [4, 1, 36], strides = [1, 1, 1]} : vector<4x10x38xf32> to vector<4x1x36xf32>
    %17 = vector.shape_cast %16 : vector<4x1x36xf32> to vector<4x36xf32>
    %18 = vector.extract_strided_slice %3 {offsets = [0, 2, 0], sizes = [4, 1, 36], strides = [1, 1, 1]} : vector<4x10x38xf32> to vector<4x1x36xf32>
    %19 = vector.shape_cast %18 : vector<4x1x36xf32> to vector<4x36xf32>
    %20 = vector.extract_strided_slice %3 {offsets = [0, 2, 1], sizes = [4, 1, 36], strides = [1, 1, 1]} : vector<4x10x38xf32> to vector<4x1x36xf32>
    %21 = vector.shape_cast %20 : vector<4x1x36xf32> to vector<4x36xf32>
    %22 = vector.extract_strided_slice %3 {offsets = [0, 2, 2], sizes = [4, 1, 36], strides = [1, 1, 1]} : vector<4x10x38xf32> to vector<4x1x36xf32>
    %23 = vector.shape_cast %22 : vector<4x1x36xf32> to vector<4x36xf32>
    %24 = tpu.concatenate %7, %9, %11, %13, %15, %17, %19, %21, %23 in 0 : vector<4x36xf32>, vector<4x36xf32>, vector<4x36xf32>, vector<4x36xf32>, vector<4x36xf32>, vector<4x36xf32>, vector<4x36xf32>, vector<4x36xf32>, vector<4x36xf32> -> vector<36x36xf32>
    %cst = arith.constant dense<0.000000e+00> : vector<8x36xf32>
    %25 = tpu.matmul %4, %24, %cst {dimension_numbers = #tpu.dot_dimension_numbers<[1], [0], [0], [1], [0, 0, 1, 1], [], []>} : vector<8x36xf32>, vector<36x36xf32>, vector<8x36xf32> -> vector<8x36xf32>
    %26 = vector.extract_strided_slice %3 {offsets = [0, 1, 0], sizes = [4, 1, 36], strides = [1, 1, 1]} : vector<4x10x38xf32> to vector<4x1x36xf32>
    %27 = vector.shape_cast %26 : vector<4x1x36xf32> to vector<4x36xf32>
    %28 = vector.extract_strided_slice %3 {offsets = [0, 1, 1], sizes = [4, 1, 36], strides = [1, 1, 1]} : vector<4x10x38xf32> to vector<4x1x36xf32>
    %29 = vector.shape_cast %28 : vector<4x1x36xf32> to vector<4x36xf32>
    %30 = vector.extract_strided_slice %3 {offsets = [0, 1, 2], sizes = [4, 1, 36], strides = [1, 1, 1]} : vector<4x10x38xf32> to vector<4x1x36xf32>
    %31 = vector.shape_cast %30 : vector<4x1x36xf32> to vector<4x36xf32>
    %32 = vector.extract_strided_slice %3 {offsets = [0, 2, 0], sizes = [4, 1, 36], strides = [1, 1, 1]} : vector<4x10x38xf32> to vector<4x1x36xf32>
    %33 = vector.shape_cast %32 : vector<4x1x36xf32> to vector<4x36xf32>
    %34 = vector.extract_strided_slice %3 {offsets = [0, 2, 1], sizes = [4, 1, 36], strides = [1, 1, 1]} : vector<4x10x38xf32> to vector<4x1x36xf32>
    %35 = vector.shape_cast %34 : vector<4x1x36xf32> to vector<4x36xf32>
    %36 = vector.extract_strided_slice %3 {offsets = [0, 2, 2], sizes = [4, 1, 36], strides = [1, 1, 1]} : vector<4x10x38xf32> to vector<4x1x36xf32>
    %37 = vector.shape_cast %36 : vector<4x1x36xf32> to vector<4x36xf32>
    %38 = vector.extract_strided_slice %3 {offsets = [0, 3, 0], sizes = [4, 1, 36], strides = [1, 1, 1]} : vector<4x10x38xf32> to vector<4x1x36xf32>
    %39 = vector.shape_cast %38 : vector<4x1x36xf32> to vector<4x36xf32>
    %40 = vector.extract_strided_slice %3 {offsets = [0, 3, 1], sizes = [4, 1, 36], strides = [1, 1, 1]} : vector<4x10x38xf32> to vector<4x1x36xf32>
    %41 = vector.shape_cast %40 : vector<4x1x36xf32> to vector<4x36xf32>
    %42 = vector.extract_strided_slice %3 {offsets = [0, 3, 2], sizes = [4, 1, 36], strides = [1, 1, 1]} : vector<4x10x38xf32> to vector<4x1x36xf32>
    %43 = vector.shape_cast %42 : vector<4x1x36xf32> to vector<4x36xf32>
    %44 = tpu.concatenate %27, %29, %31, %33, %35, %37, %39, %41, %43 in 0 : vector<4x36xf32>, vector<4x36xf32>, vector<4x36xf32>, vector<4x36xf32>, vector<4x36xf32>, vector<4x36xf32>, vector<4x36xf32>, vector<4x36xf32>, vector<4x36xf32> -> vector<36x36xf32>
    %cst_10 = arith.constant dense<0.000000e+00> : vector<8x36xf32>
    %45 = tpu.matmul %4, %44, %cst_10 {dimension_numbers = #tpu.dot_dimension_numbers<[1], [0], [0], [1], [0, 0, 1, 1], [], []>} : vector<8x36xf32>, vector<36x36xf32>, vector<8x36xf32> -> vector<8x36xf32>
    %46 = arith.maximumf %25, %45 : vector<8x36xf32>
    %cst_11 = arith.constant dense<0.000000e+00> : vector<8x32xf32>
    %47 = tpu.matmul %46, %5, %cst_11 {dimension_numbers = #tpu.dot_dimension_numbers<[1], [0], [0], [1], [0, 0, 1, 1], [], []>} : vector<8x36xf32>, vector<36x32xf32>, vector<8x32xf32> -> vector<8x32xf32>
    %48 = vector.extract_strided_slice %47 {offsets = [0, 0], sizes = [8, 16], strides = [1, 1]} : vector<8x32xf32> to vector<8x16xf32>
    %49 = vector.extract_strided_slice %47 {offsets = [0, 16], sizes = [8, 16], strides = [1, 1]} : vector<8x32xf32> to vector<8x16xf32>
    %50 = arith.maximumf %48, %49 : vector<8x16xf32>
    %51 = vector.extract_strided_slice %3 {offsets = [0, 2, 0], sizes = [4, 1, 36], strides = [1, 1, 1]} : vector<4x10x38xf32> to vector<4x1x36xf32>
    %52 = vector.shape_cast %51 : vector<4x1x36xf32> to vector<4x36xf32>
    %53 = vector.extract_strided_slice %3 {offsets = [0, 2, 1], sizes = [4, 1, 36], strides = [1, 1, 1]} : vector<4x10x38xf32> to vector<4x1x36xf32>
    %54 = vector.shape_cast %53 : vector<4x1x36xf32> to vector<4x36xf32>
    %55 = vector.extract_strided_slice %3 {offsets = [0, 2, 2], sizes = [4, 1, 36], strides = [1, 1, 1]} : vector<4x10x38xf32> to vector<4x1x36xf32>
    %56 = vector.shape_cast %55 : vector<4x1x36xf32> to vector<4x36xf32>
    %57 = vector.extract_strided_slice %3 {offsets = [0, 3, 0], sizes = [4, 1, 36], strides = [1, 1, 1]} : vector<4x10x38xf32> to vector<4x1x36xf32>
    %58 = vector.shape_cast %57 : vector<4x1x36xf32> to vector<4x36xf32>
    %59 = vector.extract_strided_slice %3 {offsets = [0, 3, 1], sizes = [4, 1, 36], strides = [1, 1, 1]} : vector<4x10x38xf32> to vector<4x1x36xf32>
    %60 = vector.shape_cast %59 : vector<4x1x36xf32> to vector<4x36xf32>
    %61 = vector.extract_strided_slice %3 {offsets = [0, 3, 2], sizes = [4, 1, 36], strides = [1, 1, 1]} : vector<4x10x38xf32> to vector<4x1x36xf32>
    %62 = vector.shape_cast %61 : vector<4x1x36xf32> to vector<4x36xf32>
    %63 = vector.extract_strided_slice %3 {offsets = [0, 4, 0], sizes = [4, 1, 36], strides = [1, 1, 1]} : vector<4x10x38xf32> to vector<4x1x36xf32>
    %64 = vector.shape_cast %63 : vector<4x1x36xf32> to vector<4x36xf32>
    %65 = vector.extract_strided_slice %3 {offsets = [0, 4, 1], sizes = [4, 1, 36], strides = [1, 1, 1]} : vector<4x10x38xf32> to vector<4x1x36xf32>
    %66 = vector.shape_cast %65 : vector<4x1x36xf32> to vector<4x36xf32>
    %67 = vector.extract_strided_slice %3 {offsets = [0, 4, 2], sizes = [4, 1, 36], strides = [1, 1, 1]} : vector<4x10x38xf32> to vector<4x1x36xf32>
    %68 = vector.shape_cast %67 : vector<4x1x36xf32> to vector<4x36xf32>
    %69 = tpu.concatenate %52, %54, %56, %58, %60, %62, %64, %66, %68 in 0 : vector<4x36xf32>, vector<4x36xf32>, vector<4x36xf32>, vector<4x36xf32>, vector<4x36xf32>, vector<4x36xf32>, vector<4x36xf32>, vector<4x36xf32>, vector<4x36xf32> -> vector<36x36xf32>
    %cst_12 = arith.constant dense<0.000000e+00> : vector<8x36xf32>
    %70 = tpu.matmul %4, %69, %cst_12 {dimension_numbers = #tpu.dot_dimension_numbers<[1], [0], [0], [1], [0, 0, 1, 1], [], []>} : vector<8x36xf32>, vector<36x36xf32>, vector<8x36xf32> -> vector<8x36xf32>
    %71 = vector.extract_strided_slice %3 {offsets = [0, 3, 0], sizes = [4, 1, 36], strides = [1, 1, 1]} : vector<4x10x38xf32> to vector<4x1x36xf32>
    %72 = vector.shape_cast %71 : vector<4x1x36xf32> to vector<4x36xf32>
    %73 = vector.extract_strided_slice %3 {offsets = [0, 3, 1], sizes = [4, 1, 36], strides = [1, 1, 1]} : vector<4x10x38xf32> to vector<4x1x36xf32>
    %74 = vector.shape_cast %73 : vector<4x1x36xf32> to vector<4x36xf32>
    %75 = vector.extract_strided_slice %3 {offsets = [0, 3, 2], sizes = [4, 1, 36], strides = [1, 1, 1]} : vector<4x10x38xf32> to vector<4x1x36xf32>
    %76 = vector.shape_cast %75 : vector<4x1x36xf32> to vector<4x36xf32>
    %77 = vector.extract_strided_slice %3 {offsets = [0, 4, 0], sizes = [4, 1, 36], strides = [1, 1, 1]} : vector<4x10x38xf32> to vector<4x1x36xf32>
    %78 = vector.shape_cast %77 : vector<4x1x36xf32> to vector<4x36xf32>
    %79 = vector.extract_strided_slice %3 {offsets = [0, 4, 1], sizes = [4, 1, 36], strides = [1, 1, 1]} : vector<4x10x38xf32> to vector<4x1x36xf32>
    %80 = vector.shape_cast %79 : vector<4x1x36xf32> to vector<4x36xf32>
    %81 = vector.extract_strided_slice %3 {offsets = [0, 4, 2], sizes = [4, 1, 36], strides = [1, 1, 1]} : vector<4x10x38xf32> to vector<4x1x36xf32>
    %82 = vector.shape_cast %81 : vector<4x1x36xf32> to vector<4x36xf32>
    %83 = vector.extract_strided_slice %3 {offsets = [0, 5, 0], sizes = [4, 1, 36], strides = [1, 1, 1]} : vector<4x10x38xf32> to vector<4x1x36xf32>
    %84 = vector.shape_cast %83 : vector<4x1x36xf32> to vector<4x36xf32>
    %85 = vector.extract_strided_slice %3 {offsets = [0, 5, 1], sizes = [4, 1, 36], strides = [1, 1, 1]} : vector<4x10x38xf32> to vector<4x1x36xf32>
    %86 = vector.shape_cast %85 : vector<4x1x36xf32> to vector<4x36xf32>
    %87 = vector.extract_strided_slice %3 {offsets = [0, 5, 2], sizes = [4, 1, 36], strides = [1, 1, 1]} : vector<4x10x38xf32> to vector<4x1x36xf32>
    %88 = vector.shape_cast %87 : vector<4x1x36xf32> to vector<4x36xf32>
    %89 = tpu.concatenate %72, %74, %76, %78, %80, %82, %84, %86, %88 in 0 : vector<4x36xf32>, vector<4x36xf32>, vector<4x36xf32>, vector<4x36xf32>, vector<4x36xf32>, vector<4x36xf32>, vector<4x36xf32>, vector<4x36xf32>, vector<4x36xf32> -> vector<36x36xf32>
    %cst_13 = arith.constant dense<0.000000e+00> : vector<8x36xf32>
    %90 = tpu.matmul %4, %89, %cst_13 {dimension_numbers = #tpu.dot_dimension_numbers<[1], [0], [0], [1], [0, 0, 1, 1], [], []>} : vector<8x36xf32>, vector<36x36xf32>, vector<8x36xf32> -> vector<8x36xf32>
    %91 = arith.maximumf %70, %90 : vector<8x36xf32>
    %cst_14 = arith.constant dense<0.000000e+00> : vector<8x32xf32>
    %92 = tpu.matmul %91, %5, %cst_14 {dimension_numbers = #tpu.dot_dimension_numbers<[1], [0], [0], [1], [0, 0, 1, 1], [], []>} : vector<8x36xf32>, vector<36x32xf32>, vector<8x32xf32> -> vector<8x32xf32>
    %93 = vector.extract_strided_slice %92 {offsets = [0, 0], sizes = [8, 16], strides = [1, 1]} : vector<8x32xf32> to vector<8x16xf32>
    %94 = vector.extract_strided_slice %92 {offsets = [0, 16], sizes = [8, 16], strides = [1, 1]} : vector<8x32xf32> to vector<8x16xf32>
    %95 = arith.maximumf %93, %94 : vector<8x16xf32>
    %96 = vector.extract_strided_slice %3 {offsets = [0, 4, 0], sizes = [4, 1, 36], strides = [1, 1, 1]} : vector<4x10x38xf32> to vector<4x1x36xf32>
    %97 = vector.shape_cast %96 : vector<4x1x36xf32> to vector<4x36xf32>
    %98 = vector.extract_strided_slice %3 {offsets = [0, 4, 1], sizes = [4, 1, 36], strides = [1, 1, 1]} : vector<4x10x38xf32> to vector<4x1x36xf32>
    %99 = vector.shape_cast %98 : vector<4x1x36xf32> to vector<4x36xf32>
    %100 = vector.extract_strided_slice %3 {offsets = [0, 4, 2], sizes = [4, 1, 36], strides = [1, 1, 1]} : vector<4x10x38xf32> to vector<4x1x36xf32>
    %101 = vector.shape_cast %100 : vector<4x1x36xf32> to vector<4x36xf32>
    %102 = vector.extract_strided_slice %3 {offsets = [0, 5, 0], sizes = [4, 1, 36], strides = [1, 1, 1]} : vector<4x10x38xf32> to vector<4x1x36xf32>
    %103 = vector.shape_cast %102 : vector<4x1x36xf32> to vector<4x36xf32>
    %104 = vector.extract_strided_slice %3 {offsets = [0, 5, 1], sizes = [4, 1, 36], strides = [1, 1, 1]} : vector<4x10x38xf32> to vector<4x1x36xf32>
    %105 = vector.shape_cast %104 : vector<4x1x36xf32> to vector<4x36xf32>
    %106 = vector.extract_strided_slice %3 {offsets = [0, 5, 2], sizes = [4, 1, 36], strides = [1, 1, 1]} : vector<4x10x38xf32> to vector<4x1x36xf32>
    %107 = vector.shape_cast %106 : vector<4x1x36xf32> to vector<4x36xf32>
    %108 = vector.extract_strided_slice %3 {offsets = [0, 6, 0], sizes = [4, 1, 36], strides = [1, 1, 1]} : vector<4x10x38xf32> to vector<4x1x36xf32>
    %109 = vector.shape_cast %108 : vector<4x1x36xf32> to vector<4x36xf32>
    %110 = vector.extract_strided_slice %3 {offsets = [0, 6, 1], sizes = [4, 1, 36], strides = [1, 1, 1]} : vector<4x10x38xf32> to vector<4x1x36xf32>
    %111 = vector.shape_cast %110 : vector<4x1x36xf32> to vector<4x36xf32>
    %112 = vector.extract_strided_slice %3 {offsets = [0, 6, 2], sizes = [4, 1, 36], strides = [1, 1, 1]} : vector<4x10x38xf32> to vector<4x1x36xf32>
    %113 = vector.shape_cast %112 : vector<4x1x36xf32> to vector<4x36xf32>
    %114 = tpu.concatenate %97, %99, %101, %103, %105, %107, %109, %111, %113 in 0 : vector<4x36xf32>, vector<4x36xf32>, vector<4x36xf32>, vector<4x36xf32>, vector<4x36xf32>, vector<4x36xf32>, vector<4x36xf32>, vector<4x36xf32>, vector<4x36xf32> -> vector<36x36xf32>
    %cst_15 = arith.constant dense<0.000000e+00> : vector<8x36xf32>
    %115 = tpu.matmul %4, %114, %cst_15 {dimension_numbers = #tpu.dot_dimension_numbers<[1], [0], [0], [1], [0, 0, 1, 1], [], []>} : vector<8x36xf32>, vector<36x36xf32>, vector<8x36xf32> -> vector<8x36xf32>
    %116 = vector.extract_strided_slice %3 {offsets = [0, 5, 0], sizes = [4, 1, 36], strides = [1, 1, 1]} : vector<4x10x38xf32> to vector<4x1x36xf32>
    %117 = vector.shape_cast %116 : vector<4x1x36xf32> to vector<4x36xf32>
    %118 = vector.extract_strided_slice %3 {offsets = [0, 5, 1], sizes = [4, 1, 36], strides = [1, 1, 1]} : vector<4x10x38xf32> to vector<4x1x36xf32>
    %119 = vector.shape_cast %118 : vector<4x1x36xf32> to vector<4x36xf32>
    %120 = vector.extract_strided_slice %3 {offsets = [0, 5, 2], sizes = [4, 1, 36], strides = [1, 1, 1]} : vector<4x10x38xf32> to vector<4x1x36xf32>
    %121 = vector.shape_cast %120 : vector<4x1x36xf32> to vector<4x36xf32>
    %122 = vector.extract_strided_slice %3 {offsets = [0, 6, 0], sizes = [4, 1, 36], strides = [1, 1, 1]} : vector<4x10x38xf32> to vector<4x1x36xf32>
    %123 = vector.shape_cast %122 : vector<4x1x36xf32> to vector<4x36xf32>
    %124 = vector.extract_strided_slice %3 {offsets = [0, 6, 1], sizes = [4, 1, 36], strides = [1, 1, 1]} : vector<4x10x38xf32> to vector<4x1x36xf32>
    %125 = vector.shape_cast %124 : vector<4x1x36xf32> to vector<4x36xf32>
    %126 = vector.extract_strided_slice %3 {offsets = [0, 6, 2], sizes = [4, 1, 36], strides = [1, 1, 1]} : vector<4x10x38xf32> to vector<4x1x36xf32>
    %127 = vector.shape_cast %126 : vector<4x1x36xf32> to vector<4x36xf32>
    %128 = vector.extract_strided_slice %3 {offsets = [0, 7, 0], sizes = [4, 1, 36], strides = [1, 1, 1]} : vector<4x10x38xf32> to vector<4x1x36xf32>
    %129 = vector.shape_cast %128 : vector<4x1x36xf32> to vector<4x36xf32>
    %130 = vector.extract_strided_slice %3 {offsets = [0, 7, 1], sizes = [4, 1, 36], strides = [1, 1, 1]} : vector<4x10x38xf32> to vector<4x1x36xf32>
    %131 = vector.shape_cast %130 : vector<4x1x36xf32> to vector<4x36xf32>
    %132 = vector.extract_strided_slice %3 {offsets = [0, 7, 2], sizes = [4, 1, 36], strides = [1, 1, 1]} : vector<4x10x38xf32> to vector<4x1x36xf32>
    %133 = vector.shape_cast %132 : vector<4x1x36xf32> to vector<4x36xf32>
    %134 = tpu.concatenate %117, %119, %121, %123, %125, %127, %129, %131, %133 in 0 : vector<4x36xf32>, vector<4x36xf32>, vector<4x36xf32>, vector<4x36xf32>, vector<4x36xf32>, vector<4x36xf32>, vector<4x36xf32>, vector<4x36xf32>, vector<4x36xf32> -> vector<36x36xf32>
    %cst_16 = arith.constant dense<0.000000e+00> : vector<8x36xf32>
    %135 = tpu.matmul %4, %134, %cst_16 {dimension_numbers = #tpu.dot_dimension_numbers<[1], [0], [0], [1], [0, 0, 1, 1], [], []>} : vector<8x36xf32>, vector<36x36xf32>, vector<8x36xf32> -> vector<8x36xf32>
    %136 = arith.maximumf %115, %135 : vector<8x36xf32>
    %cst_17 = arith.constant dense<0.000000e+00> : vector<8x32xf32>
    %137 = tpu.matmul %136, %5, %cst_17 {dimension_numbers = #tpu.dot_dimension_numbers<[1], [0], [0], [1], [0, 0, 1, 1], [], []>} : vector<8x36xf32>, vector<36x32xf32>, vector<8x32xf32> -> vector<8x32xf32>
    %138 = vector.extract_strided_slice %137 {offsets = [0, 0], sizes = [8, 16], strides = [1, 1]} : vector<8x32xf32> to vector<8x16xf32>
    %139 = vector.extract_strided_slice %137 {offsets = [0, 16], sizes = [8, 16], strides = [1, 1]} : vector<8x32xf32> to vector<8x16xf32>
    %140 = arith.maximumf %138, %139 : vector<8x16xf32>
    %141 = vector.extract_strided_slice %3 {offsets = [0, 6, 0], sizes = [4, 1, 36], strides = [1, 1, 1]} : vector<4x10x38xf32> to vector<4x1x36xf32>
    %142 = vector.shape_cast %141 : vector<4x1x36xf32> to vector<4x36xf32>
    %143 = vector.extract_strided_slice %3 {offsets = [0, 6, 1], sizes = [4, 1, 36], strides = [1, 1, 1]} : vector<4x10x38xf32> to vector<4x1x36xf32>
    %144 = vector.shape_cast %143 : vector<4x1x36xf32> to vector<4x36xf32>
    %145 = vector.extract_strided_slice %3 {offsets = [0, 6, 2], sizes = [4, 1, 36], strides = [1, 1, 1]} : vector<4x10x38xf32> to vector<4x1x36xf32>
    %146 = vector.shape_cast %145 : vector<4x1x36xf32> to vector<4x36xf32>
    %147 = vector.extract_strided_slice %3 {offsets = [0, 7, 0], sizes = [4, 1, 36], strides = [1, 1, 1]} : vector<4x10x38xf32> to vector<4x1x36xf32>
    %148 = vector.shape_cast %147 : vector<4x1x36xf32> to vector<4x36xf32>
    %149 = vector.extract_strided_slice %3 {offsets = [0, 7, 1], sizes = [4, 1, 36], strides = [1, 1, 1]} : vector<4x10x38xf32> to vector<4x1x36xf32>
    %150 = vector.shape_cast %149 : vector<4x1x36xf32> to vector<4x36xf32>
    %151 = vector.extract_strided_slice %3 {offsets = [0, 7, 2], sizes = [4, 1, 36], strides = [1, 1, 1]} : vector<4x10x38xf32> to vector<4x1x36xf32>
    %152 = vector.shape_cast %151 : vector<4x1x36xf32> to vector<4x36xf32>
    %153 = vector.extract_strided_slice %3 {offsets = [0, 8, 0], sizes = [4, 1, 36], strides = [1, 1, 1]} : vector<4x10x38xf32> to vector<4x1x36xf32>
    %154 = vector.shape_cast %153 : vector<4x1x36xf32> to vector<4x36xf32>
    %155 = vector.extract_strided_slice %3 {offsets = [0, 8, 1], sizes = [4, 1, 36], strides = [1, 1, 1]} : vector<4x10x38xf32> to vector<4x1x36xf32>
    %156 = vector.shape_cast %155 : vector<4x1x36xf32> to vector<4x36xf32>
    %157 = vector.extract_strided_slice %3 {offsets = [0, 8, 2], sizes = [4, 1, 36], strides = [1, 1, 1]} : vector<4x10x38xf32> to vector<4x1x36xf32>
    %158 = vector.shape_cast %157 : vector<4x1x36xf32> to vector<4x36xf32>
    %159 = tpu.concatenate %142, %144, %146, %148, %150, %152, %154, %156, %158 in 0 : vector<4x36xf32>, vector<4x36xf32>, vector<4x36xf32>, vector<4x36xf32>, vector<4x36xf32>, vector<4x36xf32>, vector<4x36xf32>, vector<4x36xf32>, vector<4x36xf32> -> vector<36x36xf32>
    %cst_18 = arith.constant dense<0.000000e+00> : vector<8x36xf32>
    %160 = tpu.matmul %4, %159, %cst_18 {dimension_numbers = #tpu.dot_dimension_numbers<[1], [0], [0], [1], [0, 0, 1, 1], [], []>} : vector<8x36xf32>, vector<36x36xf32>, vector<8x36xf32> -> vector<8x36xf32>
    %161 = vector.extract_strided_slice %3 {offsets = [0, 7, 0], sizes = [4, 1, 36], strides = [1, 1, 1]} : vector<4x10x38xf32> to vector<4x1x36xf32>
    %162 = vector.shape_cast %161 : vector<4x1x36xf32> to vector<4x36xf32>
    %163 = vector.extract_strided_slice %3 {offsets = [0, 7, 1], sizes = [4, 1, 36], strides = [1, 1, 1]} : vector<4x10x38xf32> to vector<4x1x36xf32>
    %164 = vector.shape_cast %163 : vector<4x1x36xf32> to vector<4x36xf32>
    %165 = vector.extract_strided_slice %3 {offsets = [0, 7, 2], sizes = [4, 1, 36], strides = [1, 1, 1]} : vector<4x10x38xf32> to vector<4x1x36xf32>
    %166 = vector.shape_cast %165 : vector<4x1x36xf32> to vector<4x36xf32>
    %167 = vector.extract_strided_slice %3 {offsets = [0, 8, 0], sizes = [4, 1, 36], strides = [1, 1, 1]} : vector<4x10x38xf32> to vector<4x1x36xf32>
    %168 = vector.shape_cast %167 : vector<4x1x36xf32> to vector<4x36xf32>
    %169 = vector.extract_strided_slice %3 {offsets = [0, 8, 1], sizes = [4, 1, 36], strides = [1, 1, 1]} : vector<4x10x38xf32> to vector<4x1x36xf32>
    %170 = vector.shape_cast %169 : vector<4x1x36xf32> to vector<4x36xf32>
    %171 = vector.extract_strided_slice %3 {offsets = [0, 8, 2], sizes = [4, 1, 36], strides = [1, 1, 1]} : vector<4x10x38xf32> to vector<4x1x36xf32>
    %172 = vector.shape_cast %171 : vector<4x1x36xf32> to vector<4x36xf32>
    %173 = vector.extract_strided_slice %3 {offsets = [0, 9, 0], sizes = [4, 1, 36], strides = [1, 1, 1]} : vector<4x10x38xf32> to vector<4x1x36xf32>
    %174 = vector.shape_cast %173 : vector<4x1x36xf32> to vector<4x36xf32>
    %175 = vector.extract_strided_slice %3 {offsets = [0, 9, 1], sizes = [4, 1, 36], strides = [1, 1, 1]} : vector<4x10x38xf32> to vector<4x1x36xf32>
    %176 = vector.shape_cast %175 : vector<4x1x36xf32> to vector<4x36xf32>
    %177 = vector.extract_strided_slice %3 {offsets = [0, 9, 2], sizes = [4, 1, 36], strides = [1, 1, 1]} : vector<4x10x38xf32> to vector<4x1x36xf32>
    %178 = vector.shape_cast %177 : vector<4x1x36xf32> to vector<4x36xf32>
    %179 = tpu.concatenate %162, %164, %166, %168, %170, %172, %174, %176, %178 in 0 : vector<4x36xf32>, vector<4x36xf32>, vector<4x36xf32>, vector<4x36xf32>, vector<4x36xf32>, vector<4x36xf32>, vector<4x36xf32>, vector<4x36xf32>, vector<4x36xf32> -> vector<36x36xf32>
    %cst_19 = arith.constant dense<0.000000e+00> : vector<8x36xf32>
    %180 = tpu.matmul %4, %179, %cst_19 {dimension_numbers = #tpu.dot_dimension_numbers<[1], [0], [0], [1], [0, 0, 1, 1], [], []>} : vector<8x36xf32>, vector<36x36xf32>, vector<8x36xf32> -> vector<8x36xf32>
    %181 = arith.maximumf %160, %180 : vector<8x36xf32>
    %cst_20 = arith.constant dense<0.000000e+00> : vector<8x32xf32>
    %182 = tpu.matmul %181, %5, %cst_20 {dimension_numbers = #tpu.dot_dimension_numbers<[1], [0], [0], [1], [0, 0, 1, 1], [], []>} : vector<8x36xf32>, vector<36x32xf32>, vector<8x32xf32> -> vector<8x32xf32>
    %183 = vector.extract_strided_slice %182 {offsets = [0, 0], sizes = [8, 16], strides = [1, 1]} : vector<8x32xf32> to vector<8x16xf32>
    %184 = vector.extract_strided_slice %182 {offsets = [0, 16], sizes = [8, 16], strides = [1, 1]} : vector<8x32xf32> to vector<8x16xf32>
    %185 = arith.maximumf %183, %184 : vector<8x16xf32>
    %186 = tpu.concatenate %50, %95, %140, %185 in 1 : vector<8x16xf32>, vector<8x16xf32>, vector<8x16xf32>, vector<8x16xf32> -> vector<8x64xf32>
    %c0_21 = arith.constant 0 : index
    %c0_22 = arith.constant 0 : index
    %c0_23 = arith.constant 0 : index
    %187 = vector.load %arg5[%c0_21, %c0_22, %c0_23] : memref<1x8x64xf32, #tpu.memory_space<vmem>>, vector<1x8x64xf32>
    %188 = vector.shape_cast %187 : vector<1x8x64xf32> to vector<8x64xf32>
    %189 = vector.shape_cast %186 : vector<8x64xf32> to vector<1x8x64xf32>
    tpu.vector_store %arg5[%c0_21, %c0_22, %c0_23], %189 {strides = array<i32>} : memref<1x8x64xf32, #tpu.memory_space<vmem>>, vector<1x8x64xf32>,
    %cst_24 = arith.constant dense<0.000000e+00> : vector<8xf32>
    %190 = vector.multi_reduction <add>, %186, %cst_24 [1] : vector<8x64xf32> to vector<8xf32>
    %191 = vector.shape_cast %190 : vector<8xf32> to vector<8x1xf32>
    %192 = arith.mulf %186, %186 : vector<8x64xf32>
    %cst_25 = arith.constant dense<0.000000e+00> : vector<8xf32>
    %193 = vector.multi_reduction <add>, %192, %cst_25 [1] : vector<8x64xf32> to vector<8xf32>
    %194 = vector.shape_cast %193 : vector<8xf32> to vector<8x1xf32>
    %195 = tpu.concatenate %191, %194 in 1 : vector<8x1xf32>, vector<8x1xf32> -> vector<8x2xf32>
    %c0_26 = arith.constant 0 : index
    %c0_27 = arith.constant 0 : index
    %c0_28 = arith.constant 0 : index
    %196 = vector.load %arg6[%c0_26, %c0_27, %c0_28] : memref<1x8x2xf32, #tpu.memory_space<vmem>>, vector<1x8x2xf32>
    %197 = vector.shape_cast %196 : vector<1x8x2xf32> to vector<8x2xf32>
    %198 = vector.shape_cast %195 : vector<8x2xf32> to vector<1x8x2xf32>
    tpu.vector_store %arg6[%c0_26, %c0_27, %c0_28], %198 {strides = array<i32>} : memref<1x8x2xf32, #tpu.memory_space<vmem>>, vector<1x8x2xf32>,
    return
  }
  func.func @transform_0(%arg0: i32) -> (i32, i32, i32) {
    %c0_i32 = arith.constant 0 : i32
    %c0_i32_0 = arith.constant 0 : i32
    %c0_i32_1 = arith.constant 0 : i32
    return %c0_i32, %arg0, %c0_i32_0 : i32, i32, i32
  }
  func.func @transform_1(%arg0: i32) -> (i32, i32, i32, i32) {
    %c0_i32 = arith.constant 0 : i32
    %c0_i32_0 = arith.constant 0 : i32
    %c0_i32_1 = arith.constant 0 : i32
    %c0_i32_2 = arith.constant 0 : i32
    return %arg0, %c0_i32, %c0_i32_0, %c0_i32_1 : i32, i32, i32, i32
  }
  func.func @transform_2(%arg0: i32) -> (i32, i32) {
    %c0_i32 = arith.constant 0 : i32
    %c0_i32_0 = arith.constant 0 : i32
    %c0_i32_1 = arith.constant 0 : i32
    return %c0_i32, %c0_i32_0 : i32, i32
  }
  func.func @transform_3(%arg0: i32) -> (i32, i32) {
    %c0_i32 = arith.constant 0 : i32
    %c0_i32_0 = arith.constant 0 : i32
    %c0_i32_1 = arith.constant 0 : i32
    return %c0_i32, %c0_i32_0 : i32, i32
  }
  func.func @transform_4(%arg0: i32) -> (i32, i32, i32) {
    %c0_i32 = arith.constant 0 : i32
    %c0_i32_0 = arith.constant 0 : i32
    %c0_i32_1 = arith.constant 0 : i32
    return %arg0, %c0_i32, %c0_i32_0 : i32, i32, i32
  }
  func.func @transform_5(%arg0: i32) -> (i32, i32, i32) {
    %c0_i32 = arith.constant 0 : i32
    %c0_i32_0 = arith.constant 0 : i32
    %c0_i32_1 = arith.constant 0 : i32
    return %arg0, %c0_i32, %c0_i32_0 : i32, i32, i32
  }
}

module attributes {stable_mosaic.version = 11 : i64} {
  func.func @bn_act_kernel(%arg0: i32, %arg1: memref<1x8x64xf32, #tpu.memory_space<vmem>>, %arg2: memref<8x4xf32, #tpu.memory_space<vmem>>, %arg3: memref<1x8x64xf32, #tpu.memory_space<vmem>>) attributes {dimension_semantics = [#tpu.dimension_semantics<parallel>], iteration_bounds = array<i64: 2>, scalar_prefetch = 0 : i64, scratch_operands = 0 : i64, tpu.core_type = #tpu.core_type<tc>, window_params = [{transform_indices = @transform_0, window_bounds = array<i64: 1, 8, 64>}, {pipeline_mode = #tpu.pipeline_mode<synchronous>, transform_indices = @transform_1, window_bounds = array<i64: 8, 4>}, {transform_indices = @transform_2, window_bounds = array<i64: 1, 8, 64>}]} {
    %c0 = arith.constant 0 : index
    %c0_0 = arith.constant 0 : index
    %c0_1 = arith.constant 0 : index
    %0 = vector.load %arg1[%c0, %c0_0, %c0_1] : memref<1x8x64xf32, #tpu.memory_space<vmem>>, vector<1x8x64xf32>
    %1 = vector.shape_cast %0 : vector<1x8x64xf32> to vector<8x64xf32>
    %c0_2 = arith.constant 0 : index
    %c0_3 = arith.constant 0 : index
    %2 = vector.load %arg2[%c0_2, %c0_3] : memref<8x4xf32, #tpu.memory_space<vmem>>, vector<8x4xf32>
    %3 = vector.extract_strided_slice %2 {offsets = [0, 0], sizes = [8, 1], strides = [1, 1]} : vector<8x4xf32> to vector<8x1xf32>
    %4 = vector.extract_strided_slice %2 {offsets = [0, 1], sizes = [8, 1], strides = [1, 1]} : vector<8x4xf32> to vector<8x1xf32>
    %5 = vector.extract_strided_slice %2 {offsets = [0, 2], sizes = [8, 1], strides = [1, 1]} : vector<8x4xf32> to vector<8x1xf32>
    %cst = arith.constant 7.812500e-03 : f32
    %6 = vector.broadcast %cst : f32 to vector<8x1xf32>
    %7 = arith.mulf %5, %6 : vector<8x1xf32>
    %8 = vector.extract_strided_slice %2 {offsets = [0, 3], sizes = [8, 1], strides = [1, 1]} : vector<8x4xf32> to vector<8x1xf32>
    %cst_4 = arith.constant 7.812500e-03 : f32
    %9 = vector.broadcast %cst_4 : f32 to vector<8x1xf32>
    %10 = arith.mulf %8, %9 : vector<8x1xf32>
    %11 = arith.mulf %7, %7 : vector<8x1xf32>
    %12 = arith.subf %10, %11 : vector<8x1xf32>
    %cst_5 = arith.constant 0.000000e+00 : f32
    %13 = vector.broadcast %cst_5 : f32 to vector<8x1xf32>
    %14 = arith.maximumf %12, %13 : vector<8x1xf32>
    %cst_6 = arith.constant 9.99999974E-6 : f32
    %15 = vector.broadcast %cst_6 : f32 to vector<8x1xf32>
    %16 = arith.addf %14, %15 : vector<8x1xf32>
    %17 = math.rsqrt %16 : vector<8x1xf32>
    %18 = arith.mulf %3, %17 : vector<8x1xf32>
    %19 = arith.mulf %7, %18 : vector<8x1xf32>
    %20 = arith.subf %4, %19 : vector<8x1xf32>
    %21 = vector.broadcast %18 : vector<8x1xf32> to vector<8x64xf32>
    %22 = arith.mulf %1, %21 : vector<8x64xf32>
    %23 = vector.broadcast %20 : vector<8x1xf32> to vector<8x64xf32>
    %24 = arith.addf %22, %23 : vector<8x64xf32>
    %cst_7 = arith.constant 0.00999999977 : f32
    %25 = vector.broadcast %cst_7 : f32 to vector<8x64xf32>
    %26 = arith.mulf %25, %24 : vector<8x64xf32>
    %27 = arith.maximumf %24, %26 : vector<8x64xf32>
    %c0_8 = arith.constant 0 : index
    %c0_9 = arith.constant 0 : index
    %c0_10 = arith.constant 0 : index
    %28 = vector.load %arg3[%c0_8, %c0_9, %c0_10] : memref<1x8x64xf32, #tpu.memory_space<vmem>>, vector<1x8x64xf32>
    %29 = vector.shape_cast %28 : vector<1x8x64xf32> to vector<8x64xf32>
    %30 = vector.shape_cast %27 : vector<8x64xf32> to vector<1x8x64xf32>
    tpu.vector_store %arg3[%c0_8, %c0_9, %c0_10], %30 {strides = array<i32>} : memref<1x8x64xf32, #tpu.memory_space<vmem>>, vector<1x8x64xf32>,
    return
  }
  func.func @transform_0(%arg0: i32) -> (i32, i32, i32) {
    %c0_i32 = arith.constant 0 : i32
    %c0_i32_0 = arith.constant 0 : i32
    %c0_i32_1 = arith.constant 0 : i32
    return %arg0, %c0_i32, %c0_i32_0 : i32, i32, i32
  }
  func.func @transform_1(%arg0: i32) -> (i32, i32) {
    %c0_i32 = arith.constant 0 : i32
    %c0_i32_0 = arith.constant 0 : i32
    %c0_i32_1 = arith.constant 0 : i32
    return %c0_i32, %c0_i32_0 : i32, i32
  }
  func.func @transform_2(%arg0: i32) -> (i32, i32, i32) {
    %c0_i32 = arith.constant 0 : i32
    %c0_i32_0 = arith.constant 0 : i32
    %c0_i32_1 = arith.constant 0 : i32
    return %arg0, %c0_i32, %c0_i32_0 : i32, i32, i32
  }
}

</mosaic_0001>

<bundles_post_ra>
// kernel: eq.29
= control target key start
LH: loop header
LB: loop body
LE: loop exit
PB: predicated region body
PF: predicated region fallthrough
CT: control target
= control target key end

     0   :  { %vm8_vm0 = vcmask 146432   ;;  %vm14_vm1 = vcmask 294032   ;;  %s42_s0 = inlined_call_operand.vmem [shape: s32[2,18], index: 0, kind: input, shape index: {}]   ;;  %s43_s1 = inlined_call_operand.vmem [shape: s32[36], index: 1, kind: output, shape index: {}]  }
   0x1   :  { %v5_v0 = vld [vmem:[%s42_s0] sm:$0x3]  ;;  %s25_s0 = smov 18  }
   0x2   :  { %6 = vst [vmem:[#allocation1] sm:$0x3] %v5_v0 }
   0x9   :  { %v11_v1 = vld [vmem:[#allocation1 + $0x1] sm:$0x1]   ;;  %v7_v2 = vld [vmem:[#allocation1] sm:$0x1]  }
   0xa   :  { %12 = vrot.lane.b32.xlu0 %v11_v1, %s25_s0  ;;  %9 = vst.msk [vmem:[#allocation0] sm:$0x1] %vm8_vm0, %v7_v2  }
  0x7c   :  { %v13_v3 = vpop.permute.xlu0 %12  }
  0x7d   :  { %15 = vst.msk [vmem:[#allocation0] sm:$0x1] %vm14_vm1, %v13_v3  }
  0x84   :  { %v20_v4 = vld [vmem:[#allocation0] sm:$0x1] }
  0x85   :  { %23 = vst [vmem:[%s43_s1] sm:$0x1] %v20_v4 }

// kernel: conv_pool_block.3
= control target key start
LH: loop header
LB: loop body
LE: loop exit
PB: predicated region body
PF: predicated region fallthrough
CT: control target
= control target key end

     0   :  { %s291_s9 = smov 0   ;;  %s315_s0 = inlined_call_operand.vmem [shape: f32[2,8,64], index: 0, kind: input, shape index: {}]   ;;  %s316_s1 = inlined_call_operand.vmem [shape: f32[8,4], index: 1, kind: input, shape index: {}]   ;;  %s317_s2 = inlined_call_operand.vmem [shape: f32[2,8,64], index: 2, kind: output, shape index: {}]  }
   0x1 LB: > { %s234_s10 = sadd.s32 4294967295, %s268_s9   ;;  %p238_p0 = scmp.ge.s32.totalorder %s268_s9, 1  ;;  %s268_s9 = sphi %s291_s9, %s12_s9  }
   0x2   : > { %p111_p1 = scmp.lt.s32.totalorder %s268_s9, 3 }
   0x4   : > { %p112_p2 = pnand %p238_p0, %p111_p1 }
   0x5   : > { %s270_s13 = smov (!%p112_p2), 1   ;;  %s272_s14 = smov (!%p112_p2), 125  }
   0x6   : > { %115 = sbr.rel (%p112_p2) target bundleno = 633 (0x279), region = 28  ;;  %s273_s15 = smov (!%p112_p2), 2  }
   0x7   : > { %s275_s16 = smov (!%p112_p2), 127   ;;  %p131_p3 = scmp.lt.s32.totalorder (!%p112_p2), %s234_s10, 1 }
   0xb   : > { %v140_v0 = vld [vmem:[%s316_s1] sm:$0xff]  ;;  %v271_v7 = vmov 0   ;;  %v274_v11 = vmov 1   ;;  %s319_s10 = smov (!%p131_p3, %s234_s10), 1  ;;  %vm179_vm0 = vcmask 523264  }
   0xc   : > { %v141_v1 = vmul.f32 0.0078125, %v140_v0  ;;  %257 = vset.pattern.permute.xlu0 %v271_v7  ;;  %258 = vset.pattern.permute.xlu1 %v274_v11  ;;  %s239_s17 = sshll.u32 %s319_s10, 3 }
   0xd   : > { %s134_s20 = scalar_lea.vmem %s315_s0, %s239_s17  ;;  %s138_s23 = scalar_lea.vmem %s317_s2, %s239_s17 }
   0xe   : > { %v142_v2 = vmul.f32 %v141_v1, %v141_v1  ;;  %v139_v17 = vld [vmem:[%s134_s20] sm:$0xff] }
  0x10   : > { %144 = vrot.lane.b32.xlu0 %v142_v2, %s270_s13 }
  0x82   : > { %v145_v3 = vpop.permute.xlu0 %144 }
  0x83   : > { %v147_v4 = vsub.f32 %v141_v1, %v145_v3 }
  0x85   : > { %v148_v5 = vmax.f32 %v147_v4, 0.0 }
  0x87   : > { %v149_v6 = vadd.f32 1e-05, %v148_v5 }
  0x89   : > { %260 = vrsqrt.f32 %v149_v6 }
  0x96   : > { %v261_v8 = vpop.eup %260 }
  0x97   : > { %152 = vrot.lane.b32.xlu0 %v261_v8, %s272_s14 }
 0x109   : > { %v153_v9 = vpop.permute.xlu0 %152 }
 0x10a   : > { %v155_v10 = vmul.f32 %v153_v9, %v140_v0 }
 0x10c   : > { %167 = vperm.xlu0 %257, %v155_v10   ;;  %157 = vrot.lane.b32.xlu1 %v155_v10, %s273_s15 }
 0x110   : > { %259 = vset.pattern.permute.xlu0 %v274_v11 }
 0x17e   : > { %v158_v12 = vpop.permute.xlu1 %157 }
 0x17f   : > { %v160_v13 = vmul.f32 %v158_v12, %v141_v1 }
 0x181   : > { %162 = vrot.lane.b32.xlu1 %v160_v13, %s275_s16 }
 0x187   : > { %v168_v16 = vpop.permute.xlu0 %167 }
 0x188   : > { %v170_v18 = vmul.f32 %v168_v16, %v139_v17 }
 0x1f3   : > { %v163_v14 = vpop.permute.xlu1 %162 }
 0x1f4   : > { %v165_v15 = vsub.f32 %v140_v0, %v163_v14 }
 0x1f6   : > { %173 = vperm.xlu1 %258, %v165_v15  }
 0x271   : > { %v174_v19 = vpop.permute.xlu1 %173 }
 0x272   : > { %v176_v20 = vadd.f32 %v174_v19, %v170_v18 }
 0x274   : > { %v177_v21 = vmul.f32 0.01, %v176_v20 }
 0x276   : > { %v178_v22 = vmax.f32 %v176_v20, %v177_v21 }
 0x278   : > { %180 = vst.msk [vmem:[%s138_s23] sm:$0xff] %vm179_vm0, %v178_v22 }
 0x279 PF: > { %s12_s9 = sadd.s32 1, %s268_s9  }
 0x27a   : > { %p9_p4 = scmp.ge.s32.totalorder %s12_s9, 4  }
 0x27c   :  { %11 = sbr.rel (!%p9_p4) target bundleno = 1 (0x1), region = 58 }

// kernel: conv_pool_block.2
= control target key start
LH: loop header
LB: loop body
LE: loop exit
PB: predicated region body
PF: predicated region fallthrough
CT: control target
= control target key end

     0   :  { %s1975_s18 = smov 0   ;;  %s1977_s19 = smov 0   ;;  %s2575_s0 = inlined_call_operand.vmem [shape: f32[4,18,38], index: 0, kind: input, shape index: {}]   ;;  %s2576_s1 = inlined_call_operand.vmem [shape: f32[2,4,2,38], index: 1, kind: input, shape index: {}]   ;;  %s2577_s2 = inlined_call_operand.vmem [shape: f32[8,36], index: 2, kind: input, shape index: {}]   ;;  %s2578_s3 = inlined_call_operand.vmem [shape: f32[36,32], index: 3, kind: input, shape index: {}]   ;;  %s2579_s4 = inlined_call_operand.vmem [shape: f32[2,8,64], index: 4, kind: output, shape index: {0}]   ;;  %s2580_s5 = inlined_call_operand.vmem [shape: f32[2,8,2], index: 5, kind: output, shape index: {1}]  }
   0x1   :  { %s1979_s20 = smov 0  }
   0x2 LB: > { %s1614_s21 = sadd.s32 4294967295, %s1935_s20   ;;  %s1992_s22 = sadd.s32 1, %s1935_s20   ;;  %s1935_s20 = sphi %s1979_s20, %s2583_s20   ;;  %s1931_s19 = sphi %s1977_s19, %s2582_s19   ;;  %s1927_s18 = sphi %s1975_s18, %s2581_s18  }
   0x3   : > { %s20_s23 = ssub.s32 %s1935_s20, %s1992_s22  ;;  %s23_s24 = sadd.s32 1, %s1931_s19 }
   0x4   : > { %p21_p0 = scmp.eq.s32.totalorder %s20_s23, 0  ;;  %p30_p1 = scmp.ne.s32.totalorder %s1931_s19, %s1927_s18 }
   0x5   : > { %p31_p2 = scmp.eq.s32.totalorder %s1935_s20, 0  ;;  %p1617_p4 = scmp.ge.s32.totalorder %s1935_s20, 2 }
   0x6   : > { %s2001_s25 = scalar_select %p21_p0, %s1931_s19, %s23_s24  }
   0x7   : > { %p32_p3 = por %p31_p2, %p30_p1  ;;  %182 = sbr.rel (%p1617_p4) target bundleno = 18 (0x12), region = 24 }
   0xc   : > { %185 = sbr.rel (!%p32_p3) target bundleno = 18 (0x12), region = 28  ;;  %s187_s26 = sand.u32 (%p32_p3), 1, %s1931_s19  }
   0xd   : > { %s1619_s27 = sshll.u32 (%p32_p3), %s1935_s20, 3  ;;  %s1618_s28 = sshll.u32 (%p32_p3), %s187_s26, 5 }
   0xe   : > { %s191_s6 = scalar_lea.vmem (%p32_p3), %s2575_s0, %s1619_s27  ;;  %s189_s7 = scalar_lea.vmem (%p32_p3), [#allocation2], %s1618_s28 }
   0xf   : > { %v226_v0 = vld [vmem:[%s191_s6] sm:$0xff] (%p32_p3)  ;;  %v228_v1 = vld [vmem:[%s191_s6 + $0x18] sm:$0xff] (%p32_p3)  ;;  %v230_v2 = vld [vmem:[%s191_s6 + $0x30] sm:$0xff] (%p32_p3) }
  0x10   : > { %227 = vst [vmem:[%s189_s7] sm:$0xff] (%p32_p3), %v226_v0  ;;  %229 = vst [vmem:[%s189_s7 + $0x8] sm:$0xff] (%p32_p3), %v228_v1  ;;  %v232_v3 = vld [vmem:[%s191_s6 + $0x48] sm:$0xff] (%p32_p3) }
  0x11   : > { %231 = vst [vmem:[%s189_s7 + $0x10] sm:$0xff] %v230_v2  ;;  %233 = vst [vmem:[%s189_s7 + $0x18] sm:$0xff] %v232_v3 }
  0x12 PF: > { %p1620_p5 = scmp.ge.s32.totalorder %s1935_s20, 1  ;;  %p246_p6 = scmp.lt.s32.totalorder %s1935_s20, 3 }
  0x14   : > { %p247_p7 = pnand %p1620_p5, %p246_p6 }
  0x15   : > { %s253_s8 = sand.u32 (!%p247_p7), 1, %s1927_s18   ;;  %s1938_s11 = smov (!%p247_p7), 127  }
  0x16   : > { %250 = sbr.rel (%p247_p7) target bundleno = 1551 (0x60f), region = 70  ;;  %s1621_s9 = sshll.u32 (!%p247_p7), %s253_s8, 5 }
  0x17   : > { %s255_s10 = scalar_lea.vmem (!%p247_p7), [#allocation2], %s1621_s9  ;;  %s1939_s12 = smov (!%p247_p7), 126  }
  0x18   : > { %p288_p8 = scmp.lt.s32.totalorder (!%p247_p7), %s1614_s21, 1  ;;  %s1941_s20 = smov (!%p247_p7), 112  }
  0x19   : > { %s1943_s9 = smov (!%p247_p7), 16  }
  0x1b   : > { %vm331_vm0 = vcmask 1045509   ;;  %vm334_vm1 = vcmask 1046534   ;;  %vm337_vm2 = vcmask 1047559   ;;  %v1937_v4 = vmov 0.0   ;;  %v2014_v5 = vld [vmem:[%s255_s10] sm:$0xff]  ;;  %v2016_v6 = vld [vmem:[%s255_s10 + $0x8] sm:$0xff] }
  0x1c   : > { %1725 = vmatprep.subr.mxu0 %v1937_v4  ;;  %1738 = vmatprep.subr.mxu1 %v1937_v4  ;;  %v2018_v7 = vld [vmem:[%s255_s10 + $0x10] sm:$0xff]  ;;  %vm320_vm3 = vcmask 1041409   ;;  %vm323_vm4 = vcmask 1042434   ;;  %vm326_vm5 = vcmask 1043459   ;;  %v2020_v8 = vld [vmem:[%s255_s10 + $0x18] sm:$0xff]  ;;  %v372_v9 = vrot.slane %v2014_v5, 6 }
  0x1d   : > { %v373_v10 = vrot.slane %v2016_v6, 5  ;;  %v375_v11 = vrot.slane %v2018_v7, 4  ;;  %v365_v12 = vrot.slane %v2014_v5, 2  ;;  %v377_v13 = vrot.slane %v2020_v8, 3  ;;  %s2585_s21 = smov (!%p288_p8, %s1614_s21), 1  ;;  %s1944_s10 = smov 48  }
  0x1e   : > { %v366_v14 = vrot.slane %v2016_v6, 1  ;;  %v369_v15 = vrot.slane %v2020_v8, 7  ;;  %v486_v16 = vrot.slane %v2014_v5, 7  ;;  %v487_v18 = vrot.slane %v2016_v6, 6  ;;  %s2380_s30 = sshll.u32 %s2585_s21, 3  ;;  %s1942_s21 = smov 32  }
  0x1f   : > { %v374_v17 = vsel %vm331_vm0, %v373_v10, %v372_v9  ;;  %v489_v19 = vrot.slane %v2018_v7, 5  ;;  %v491_v20 = vrot.slane %v2020_v8, 4  ;;  %v479_v23 = vrot.slane %v2014_v5, 3  ;;  %s292_s8 = scalar_lea.vmem %s2576_s1, %s2380_s30  ;;  %s296_s13 = scalar_lea.vmem %s2579_s4, %s2380_s30 }
  0x20   : > { %v376_v21 = vsel %vm334_vm1, %v375_v11, %v374_v17  ;;  %v367_v22 = vsel %vm320_vm3, %v366_v14, %v365_v12  ;;  %v480_v24 = vrot.slane %v2016_v6, 2  ;;  %v488_v27 = vsel %vm331_vm0, %v487_v18, %v486_v16  ;;  %s300_s16 = scalar_lea.vmem %s2580_s5, %s2380_s30 }
  0x21   : > { %v2051_v25 = vsel %vm337_vm2, %v377_v13, %v376_v21  ;;  %v368_v26 = vsel %vm323_vm4, %v2018_v7, %v367_v22  ;;  %v482_v28 = vrot.slane %v2018_v7, 1  ;;  %v490_v30 = vsel %vm334_vm1, %v489_v19, %v488_v27 }
  0x22   : > { %379 = vrot.lane.b32.xlu1 %v2051_v25, %s1938_s11  ;;  %v2066_v29 = vsel %vm326_vm5, %v369_v15, %v368_v26  ;;  %v481_v31 = vsel %vm320_vm3, %v480_v24, %v479_v23  ;;  %v353_v32 = vrot.slane %v2014_v5, 1  ;;  %v2082_v33 = vsel %vm337_vm2, %v491_v20, %v490_v30 }
  0x23   : > { %382 = vrot.lane.b32.xlu0 %v2066_v29, %s1939_s12  ;;  %v483_v34 = vsel %vm323_vm4, %v482_v28, %v481_v31  ;;  %v355_v35 = vrot.slane %v2018_v7, 7  ;;  %v357_v36 = vrot.slane %v2020_v8, 6  ;;  %v345_v39 = vrot.slane %v2014_v5, 5 }
  0x24   : > { %v2091_v37 = vsel %vm326_vm5, %v2020_v8, %v483_v34  ;;  %v354_v38 = vsel %vm320_vm3, %v2016_v6, %v353_v32  ;;  %v346_v40 = vrot.slane %v2016_v6, 4  ;;  %v348_v42 = vrot.slane %v2018_v7, 3 }
  0x25   : > { %v356_v41 = vsel %vm323_vm4, %v355_v35, %v354_v38  ;;  %v350_v43 = vrot.slane %v2020_v8, 2  ;;  %v319_v45 = vrot.slane %v2016_v6, 7  ;;  %v322_v49 = vrot.slane %v2018_v7, 6 }
  0x26   : > { %493 = vrot.lane.b32.xlu1 %v2082_v33, %s1938_s11  ;;  %v347_v44 = vsel %vm331_vm0, %v346_v40, %v345_v39  ;;  %v2108_v47 = vsel %vm326_vm5, %v357_v36, %v356_v41  ;;  %v329_v51 = vrot.slane %v2014_v5, 4  ;;  %v330_v52 = vrot.slane %v2016_v6, 3  ;;  %v2286_v41 = vld [vmem:[%s2577_s2] sm:$0xff] }
  0x27   : > { %496 = vrot.lane.b32.xlu0 %v2091_v37, %s1939_s12  ;;  %v349_v46 = vsel %vm334_vm1, %v348_v42, %v347_v44  ;;  %v321_v50 = vsel %vm320_vm3, %v319_v45, %v2014_v5  ;;  %v325_v53 = vrot.slane %v2020_v8, 5  ;;  %v333_v55 = vrot.slane %v2018_v7, 2  ;;  %v2297_v44 = vld [vmem:[%s2578_s3 + $0x20] sm:$0xf] }
  0x28   : > { %v2111_v48 = vsel %vm337_vm2, %v350_v43, %v349_v46  ;;  %v324_v54 = vsel %vm323_vm4, %v322_v49, %v321_v50  ;;  %vm1940_vm6 = vmmov 0   ;;  %v332_v56 = vsel %vm331_vm0, %v330_v52, %v329_v51 }
  0x29   : > { %1735 = vmatprep.mubr.msk.f32.mxu0 %vm1940_vm6, %v1937_v4  ;;  %1748 = vmatprep.mubr.msk.f32.mxu1 %vm1940_vm6, %v1937_v4  ;;  %v2135_v57 = vsel %vm326_vm5, %v325_v53, %v324_v54  ;;  %v336_v58 = vrot.slane %v2020_v8, 1  ;;  %v335_v59 = vsel %vm334_vm1, %v333_v55, %v332_v56  ;;  %v759_v60 = vsel %vm320_vm3, %v346_v40, %v345_v39 }
  0x2a   : > { %362 = vrot.lane.b32.xlu1 %v2111_v48, %s1939_s12  ;;  %v664_v61 = vsel %vm320_vm3, %v330_v52, %v329_v51  ;;  %v760_v63 = vsel %vm323_vm4, %v348_v42, %v759_v60  ;;  %v763_v1 = vsel %vm331_vm0, %v2016_v6, %v353_v32  ;;  %v668_v2 = vsel %vm331_vm0, %v319_v45, %v2014_v5  ;;  %v2334_v51 = vld [vmem:[%s2578_s3 + $0x8] sm:$0xff] }
  0x2b   : > { %359 = vrot.lane.b32.xlu0 %v2108_v47, %s1938_s11  ;;  %v338_v62 = vsel %vm337_vm2, %v336_v58, %v335_v59  ;;  %v665_v0 = vsel %vm323_vm4, %v333_v55, %v664_v61  ;;  %v2156_v3 = vsel %vm326_vm5, %v350_v43, %v760_v63  ;;  %v764_v21 = vsel %vm334_vm1, %v355_v35, %v763_v1  ;;  %v307_v61 = vld [vmem:[%s292_s8 + $0x4] sm:$0x3] }
  0x2c   : > { %v2159_v17 = vsel %vm326_vm5, %v336_v58, %v665_v0  ;;  %v669_v22 = vsel %vm334_vm1, %v322_v49, %v668_v2  ;;  %v2168_v26 = vsel %vm337_vm2, %v357_v36, %v764_v21  ;;  %v1028_v30 = vsel %vm320_vm3, %v487_v18, %v486_v16  ;;  %v306_v58 = vld [vmem:[%s292_s8 + $0x2] sm:$0x3] }
  0x2d   : > { %v2171_v27 = vsel %vm337_vm2, %v325_v53, %v669_v22  ;;  %v933_v31 = vsel %vm320_vm3, %v373_v10, %v372_v9  ;;  %v1029_v32 = vsel %vm323_vm4, %v489_v19, %v1028_v30  ;;  %v1032_v18 = vsel %vm331_vm0, %v480_v24, %v479_v23 }
  0x2e   : > { %476 = vrot.lane.b32.xlu1 %v2051_v25, %s1939_s12  ;;  %v934_v16 = vsel %vm323_vm4, %v375_v11, %v933_v31  ;;  %v937_v9 = vsel %vm331_vm0, %v366_v14, %v365_v12  ;;  %v2214_v10 = vsel %vm326_vm5, %v491_v20, %v1029_v32  ;;  %v1033_v5 = vsel %vm334_vm1, %v482_v28, %v1032_v18 }
  0x2f   : > { %473 = vrot.lane.b32.xlu0 %v2066_v29, %s1938_s11  ;;  %v2219_v11 = vsel %vm326_vm5, %v377_v13, %v934_v16  ;;  %v938_v6 = vsel %vm334_vm1, %v2018_v7, %v937_v9  ;;  %v2232_v12 = vsel %vm337_vm2, %v2020_v8, %v1033_v5  ;;  %vm384_vm7 = vcmask 1043456  }
  0x30   : > { %v2237_v13 = vsel %vm337_vm2, %v369_v15, %v938_v6  ;;  %vm389_vm8 = vcmask 293888   ;;  %v1214_v60 = vrot.slane %v306_v58, 3  ;;  %v1216_v0 = vrot.slane %v307_v61, 2 }
  0x31   : > { %v1206_v22 = vrot.slane %v306_v58, 7  ;;  %v1208_v30 = vrot.slane %v307_v61, 6  ;;  %v1316_v16 = vrot.slane %v306_v58, 4  ;;  %v1318_v5 = vrot.slane %v307_v61, 3 }
  0x32   : > { %469 = vrot.lane.b32.xlu1 %v2108_v47, %s1939_s12  ;;  %vm1493_vm9 = vcmask 130048   ;;  %vm1495_vm10 = vcmask 261120   ;;  %vm1497_vm11 = vcmask 392192   ;;  %vm1499_vm12 = vcmask 523264  }
  0x33   : > { %342 = vrot.lane.b32.xlu0 %v2135_v57, %s1939_s12  ;;  %vm1508_vm13 = vcmask 7168   ;;  %vm1510_vm14 = vcmask 15360  }
  0x36   : > { %466 = vrot.lane.b32.xlu1 %v2111_v48, %s1938_s11 }
  0x37   : > { %339 = vrot.lane.b32.xlu0 %v338_v62, %s1938_s11  ;;  %v308_v62 = vld [vmem:[%s292_s8 + $0x6] sm:$0x3] }
  0x38   : > { %v1218_v1 = vrot.slane %v308_v62, 1  ;;  %v1312_v21 = vrot.slane %v308_v62, 6  ;;  %v1210_v31 = vrot.slane %v308_v62, 5  ;;  %v1320_v6 = vrot.slane %v308_v62, 2 }
  0x3a   : > { %769 = vrot.lane.b32.xlu1 %v2156_v3, %s1939_s12 }
  0x3b   : > { %674 = vrot.lane.b32.xlu0 %v2159_v17, %s1939_s12 }
  0x3e   : > { %766 = vrot.lane.b32.xlu1 %v2168_v26, %s1938_s11 }
  0x3f   : > { %671 = vrot.lane.b32.xlu0 %v2171_v27, %s1938_s11 }
  0x42   : > { %661 = vrot.lane.b32.xlu1 %v2082_v33, %s1939_s12 }
  0x43   : > { %658 = vrot.lane.b32.xlu0 %v2091_v37, %s1938_s11 }
  0x46   : > { %756 = vrot.lane.b32.xlu1 %v2171_v27, %s1939_s12 }
  0x47   : > { %753 = vrot.lane.b32.xlu0 %v2159_v17, %s1938_s11 }
  0x4a   : > { %1038 = vrot.lane.b32.xlu1 %v2214_v10, %s1939_s12 }
  0x4b   : > { %943 = vrot.lane.b32.xlu0 %v2219_v11, %s1939_s12 }
  0x4e   : > { %1035 = vrot.lane.b32.xlu1 %v2232_v12, %s1938_s11 }
  0x4f   : > { %940 = vrot.lane.b32.xlu0 %v2237_v13, %s1938_s11 }
  0x52   : > { %930 = vrot.lane.b32.xlu1 %v2168_v26, %s1939_s12 }
  0x53   : > { %927 = vrot.lane.b32.xlu0 %v2156_v3, %s1938_s11 }
  0x56   : > { %1025 = vrot.lane.b32.xlu1 %v2237_v13, %s1939_s12 }
  0x57   : > { %1022 = vrot.lane.b32.xlu0 %v2219_v11, %s1938_s11 }
  0x94   : > { %v380_v7 = vpop.permute.xlu1 %379 }
  0x95   : > { %v2251_v8 = vpop.permute.xlu0 %382  ;;  %v2255_v14 = vsel %vm384_vm7, %v2066_v29, %v380_v7 }
  0x96   : > { %1726 = vmatpush3.msk.msra.mxu0 %vm384_vm7, %v2251_v8  ;;  %v676_v56 = vsel %vm384_vm7, %v2251_v8, %v2082_v33  ;;  %v2370_v33 = vld [vmem:[%s2578_s3] sm:$0xff] }
  0x97   : > { %1727 = vmatprep.subr.mxu0 %v1937_v4 }
  0x98   : > { %1728 = vmatpush3.msra.mxu0 %v2255_v14  ;;  %v494_v15 = vpop.permute.xlu1 %493 }
  0x99   : > { %v2261_v19 = vpop.permute.xlu0 %496  ;;  %v2265_v20 = vsel %vm384_vm7, %v2091_v37, %v494_v15  ;;  %1729 = vmatprep.subr.mxu0 %v1937_v4 }
  0x9a   : > { %1739 = vmatpush3.msk.msra.mxu1 %vm384_vm7, %v2261_v19 }
  0x9b   : > { %1740 = vmatprep.subr.mxu1 %v1937_v4 }
  0x9c   : > { %1741 = vmatpush3.msra.mxu1 %v2265_v20  ;;  %v363_v23 = vpop.permute.xlu1 %362 }
  0x9d   : > { %v360_v24 = vpop.permute.xlu0 %359  ;;  %1742 = vmatprep.subr.mxu1 %v1937_v4 }
  0x9e   : > { %v387_v28 = vsel %vm384_vm7, %v360_v24, %v363_v23 }
  0x9f   : > { %1730 = vmatpush3.msra.mxu0 %v387_v28 }
  0xa0   : > { %v477_v29 = vpop.permute.xlu1 %476  ;;  %1731 = vmatprep.subr.mxu0 %v1937_v4 }
  0xa1   : > { %v474_v34 = vpop.permute.xlu0 %473 }
  0xa2   : > { %v500_v35 = vsel %vm384_vm7, %v474_v34, %v477_v29 }
  0xa3   : > { %1743 = vmatpush3.msra.mxu1 %v500_v35 }
  0xa4   : > { %v470_v36 = vpop.permute.xlu1 %469  ;;  %1744 = vmatprep.subr.mxu1 %v1937_v4 }
  0xa5   : > { %v343_v37 = vpop.permute.xlu0 %342  ;;  %v499_v38 = vsel %vm384_vm7, %v470_v36, %v2051_v25 }
  0xa6   : > { %v386_v39 = vsel %vm384_vm7, %v343_v37, %v2111_v48  ;;  %1745 = vmatpush3.msra.mxu1 %v499_v38  ;;  %v2323_v48 = vld [vmem:[%s2578_s3 + $0x10] sm:$0xff] }
  0xa7   : > { %1732 = vmatpush3.msra.mxu0 %v386_v39  ;;  %1746 = vmatprep.subr.mxu1 %v1937_v4 }
  0xa8   : > { %v467_v40 = vpop.permute.xlu1 %466  ;;  %1733 = vmatprep.subr.mxu0 %v1937_v4 }
  0xa9   : > { %v340_v42 = vpop.permute.xlu0 %339  ;;  %v498_v25 = vsel %vm384_vm7, %v2108_v47, %v467_v40  ;;  %v2310_v47 = vld [vmem:[%s2578_s3 + $0x18] sm:$0xff] }
  0xaa   : > { %v385_v43 = vsel %vm384_vm7, %v2135_v57, %v340_v42  ;;  %1747 = vmatpush3.msra.mxu1 %v498_v25  ;;  %v305_v57 = vld [vmem:[%s292_s8] sm:$0x3] }
  0xab   : > { %1734 = vmatpush3.msra.mxu0 %v385_v43  ;;  %1749 = vmatmul.mubr.msk.f32.vlgmr.msra.gmra.mxu1 %vm389_vm8, %v2286_v41  ;;  %v1213_v59 = vrot.slane %v305_v57, 4  ;;  %v1308_v2 = vrot.slane %v305_v57, 1  ;;  %v1315_v32 = vrot.slane %v305_v57, 5  ;;  %v1207_v9 = vsel %vm320_vm3, %v1206_v22, %v305_v57 }
  0xac   : > { %1736 = vmatmul.mubr.msk.f32.vlgmr.msra.gmra.mxu0 %vm389_vm8, %v2286_v41  ;;  %v2301_v45 = vpop.permute.xlu1 %769  ;;  %1764 = vmatprep.subr.mxu1 %v1937_v4 }
  0xad   : > { %v2304_v46 = vpop.permute.xlu0 %674  ;;  %1751 = vmatprep.subr.mxu0 %v1937_v4  ;;  %1761 = vmatprep.mubr.msk.f32.mxu0 %vm1940_vm6, %v1937_v4  ;;  %v1215_v63 = vsel %vm331_vm0, %v1214_v60, %v1213_v59  ;;  %v1309_v18 = vsel %vm320_vm3, %v306_v58, %v1308_v2  ;;  %v1317_v15 = vsel %vm331_vm0, %v1316_v16, %v1315_v32 }
  0xae   : > { %1765 = vmatpush3.msk.msra.mxu1 %vm384_vm7, %v2304_v46  ;;  %1752 = vmatpush3.msk.msra.mxu0 %vm384_vm7, %v2297_v44  ;;  %v1217_v7 = vsel %vm334_vm1, %v1216_v0, %v1215_v63  ;;  %v1319_v28 = vsel %vm334_vm1, %v1318_v5, %v1317_v15 }
  0xaf   : > { %1766 = vmatprep.subr.mxu1 %v1937_v4  ;;  %1753 = vmatprep.subr.mxu0 %v1937_v4  ;;  %v2405_v29 = vsel %vm337_vm2, %v1218_v1, %v1217_v7  ;;  %v1321_v34 = vsel %vm337_vm2, %v1320_v6, %v1319_v28 }
  0xb0   : > { %v2325_v49 = vpop.permute.xlu1 %766  ;;  %1754 = vmatpush3.msra.mxu0 %v2310_v47  ;;  %1774 = vmatprep.mubr.msk.f32.mxu1 %vm1940_vm6, %v1937_v4 }
  0xb1   : > { %v672_v50 = vpop.permute.xlu0 %671  ;;  %1755 = vmatprep.subr.mxu0 %v1937_v4 }
  0xb2   : > { %v2338_v52 = vsel %vm384_vm7, %v2159_v17, %v672_v50  ;;  %1756 = vmatpush3.msra.mxu0 %v2323_v48  ;;  %v1310_v17 = vrot.slane %v307_v61, 7  ;;  %v2431_v50 = vsel %vm384_vm7, %v2156_v3, %v2325_v49 }
  0xb3   : > { %1767 = vmatpush3.msra.mxu1 %v2338_v52  ;;  %1757 = vmatprep.subr.mxu0 %v1937_v4 }
  0xb4   : > { %v662_v53 = vpop.permute.xlu1 %661  ;;  %1768 = vmatprep.subr.mxu1 %v1937_v4  ;;  %1758 = vmatpush3.msra.mxu0 %v2334_v51  ;;  %v1311_v8 = vsel %vm323_vm4, %v1310_v17, %v1309_v18 }
  0xb5   : > { %v659_v54 = vpop.permute.xlu0 %658  ;;  %1759 = vmatprep.subr.mxu0 %v1937_v4  ;;  %v2394_v23 = vsel %vm326_vm5, %v1312_v21, %v1311_v8  ;;  %v1040_v21 = vsel %vm384_vm7, %v2301_v45, %v2237_v13 }
  0xb6   : > { %v677_v55 = vsel %vm384_vm7, %v659_v54, %v662_v53  ;;  %1760 = vmatpush3.msra.mxu0 %v2370_v33  ;;  %1325 = vrot.lane.b32.xlu1 %v2394_v23, %s1939_s12 }
  0xb7   : > { %1769 = vmatpush3.msra.mxu1 %v677_v55  ;;  %1777 = vmatprep.subr.mxu0 %v1937_v4 }
  0xb8   : > { %1770 = vmatprep.subr.mxu1 %v1937_v4  ;;  %v757_v35 = vpop.permute.xlu1 %756 }
  0xb9   : > { %1771 = vmatpush3.msra.mxu1 %v676_v56  ;;  %v754_v36 = vpop.permute.xlu0 %753  ;;  %v771_v56 = vsel %vm384_vm7, %v2261_v19, %v2171_v27 }
  0xba   : > { %1772 = vmatprep.subr.mxu1 %v1937_v4  ;;  %1322 = vrot.lane.b32.xlu1 %v1321_v34, %s1938_s11  ;;  %v772_v53 = vsel %vm384_vm7, %v754_v36, %v757_v35 }
  0xbb   : > { %1773 = vmatpush3.msra.mxu1 %v2255_v14  ;;  %v1209_v14 = vsel %vm323_vm4, %v1208_v30, %v1207_v9 }
  0xbc   : > { %1775 = vmatmul.mubr.msk.f32.vlgmr.msra.gmra.mxu1 %vm389_vm8, %v2286_v41  ;;  %1790 = vmatprep.subr.mxu1 %v1937_v4  ;;  %v2397_v24 = vsel %vm326_vm5, %v1210_v31, %v1209_v14  ;;  %v2419_v38 = vpop.permute.xlu1 %1038 }
  0xbd   : > { %1791 = vmatpush3.msk.msra.mxu1 %vm384_vm7, %v2297_v44  ;;  %1800 = vmatprep.mubr.msk.f32.mxu1 %vm1940_vm6, %v1937_v4  ;;  %v2421_v40 = vpop.permute.xlu0 %943  ;;  %v1327_v5 = vsel %vm384_vm7, %v2419_v38, %v2405_v29 }
  0xbe   : > { %1792 = vmatprep.subr.mxu1 %v1937_v4  ;;  %1223 = vrot.lane.b32.xlu0 %v2397_v24, %s1939_s12 }
  0xbf   : > { %1793 = vmatpush3.msra.mxu1 %v2310_v47  ;;  %1199 = vrot.lane.b32.xlu1 %v2232_v12, %s1939_s12 }
  0xc0   : > { %1794 = vmatprep.subr.mxu1 %v1937_v4  ;;  %v1036_v54 = vpop.permute.xlu1 %1035 }
  0xc1   : > { %1795 = vmatpush3.msra.mxu1 %v2323_v48  ;;  %v941_v55 = vpop.permute.xlu0 %940  ;;  %v2489_v0 = vsel %vm384_vm7, %v2214_v10, %v1036_v54 }
  0xc2   : > { %1796 = vmatprep.subr.mxu1 %v1937_v4  ;;  %1220 = vrot.lane.b32.xlu0 %v2405_v29, %s1938_s11  ;;  %v2445_v57 = vsel %vm384_vm7, %v2219_v11, %v941_v55  ;;  %v945_v11 = vsel %vm384_vm7, %v2304_v46, %v2168_v26 }
  0xc3   : > { %1797 = vmatpush3.msra.mxu1 %v2334_v51  ;;  %1305 = vrot.lane.b32.xlu1 %v2405_v29, %s1939_s12 }
  0xc4   : > { %1798 = vmatprep.subr.mxu1 %v1937_v4  ;;  %v931_v3 = vpop.permute.xlu1 %930 }
  0xc5   : > { %1799 = vmatpush3.msra.mxu1 %v2370_v33  ;;  %v928_v49 = vpop.permute.xlu0 %927 }
  0xc6   : > { %1816 = vmatprep.subr.mxu1 %v1937_v4  ;;  %1196 = vrot.lane.b32.xlu0 %v2214_v10, %s1938_s11  ;;  %v946_v27 = vsel %vm384_vm7, %v928_v49, %v931_v3 }
  0xc9   : > { %v1023_v58 = vpop.permute.xlu0 %1022 }
  0xca   : > { %1302 = vrot.lane.b32.xlu0 %v2397_v24, %s1938_s11 }
 0x130   : > { %v1224_v61 = vpop.permute.xlu0 %1223 }
 0x134   : > { %v1221_v17 = vpop.permute.xlu0 %1220 }
 0x135   : > { %v1227_v30 = vsel %vm384_vm7, %v2397_v24, %v1221_v17 }
 0x138   : > { %v1197_v22 = vpop.permute.xlu0 %1196 }
 0x16b   : > { %v570_v37 = vpop.f32.mrf.mxu1 }
 0x16c   : > { %v461_v39 = vpop.f32.mrf.mxu0 }
 0x16d   : > { %v574_v42 = vmax.f32 %v461_v39, %v570_v37  ;;  %v1750_v25 = vpop.f32.mrf.mxu1 }
 0x16e   : > { %v1737_v43 = vpop.f32.mrf.mxu0 }
 0x16f   : > { %1762 = vmatmul.mubr.msk.f32.vlgmr.msra.gmra.mxu0 %vm389_vm8, %v574_v42 }
 0x170   : > { %1778 = vmatpush3.msk.msra.mxu0 %vm384_vm7, %v2301_v45  ;;  %1787 = vmatprep.mubr.msk.f32.mxu0 %vm1940_vm6, %v1937_v4  ;;  %v1225_v45 = vsel %vm384_vm7, %v2421_v40, %v2232_v12 }
 0x171   : > { %1779 = vmatprep.subr.mxu0 %v1937_v4 }
 0x172   : > { %1780 = vmatpush3.msra.mxu0 %v2431_v50 }
 0x173   : > { %1781 = vmatprep.subr.mxu0 %v1937_v4 }
 0x174   : > { %1782 = vmatpush3.msra.mxu0 %v772_v53 }
 0x175   : > { %1783 = vmatprep.subr.mxu0 %v1937_v4 }
 0x176   : > { %1784 = vmatpush3.msra.mxu0 %v771_v56 }
 0x177   : > { %1785 = vmatprep.subr.mxu0 %v1937_v4 }
 0x178   : > { %1786 = vmatpush3.msra.mxu0 %v2265_v20 }
 0x179   : > { %1788 = vmatmul.mubr.msk.f32.vlgmr.msra.gmra.mxu0 %vm389_vm8, %v2286_v41  ;;  %1803 = vmatprep.subr.mxu0 %v1937_v4 }
 0x17a   : > { %1804 = vmatpush3.msk.msra.mxu0 %vm384_vm7, %v2421_v40  ;;  %1813 = vmatprep.mubr.msk.f32.mxu0 %vm1940_vm6, %v1937_v4 }
 0x17b   : > { %1805 = vmatprep.subr.mxu0 %v1937_v4 }
 0x17c   : > { %1806 = vmatpush3.msra.mxu0 %v2445_v57  ;;  %v747_v26 = vpop.f32.mrf.mxu1 }
 0x17d   : > { %1807 = vmatprep.subr.mxu0 %v1937_v4 }
 0x17e   : > { %1808 = vmatpush3.msra.mxu0 %v946_v27  ;;  %v1776_v19 = vpop.f32.mrf.mxu1 }
 0x17f   : > { %1809 = vmatprep.subr.mxu0 %v1937_v4 }
 0x180   : > { %1810 = vmatpush3.msra.mxu0 %v945_v11 }
 0x181   : > { %1811 = vmatprep.subr.mxu0 %v1937_v4 }
 0x182   : > { %1812 = vmatpush3.msra.mxu0 %v2338_v52  ;;  %v1026_v52 = vpop.permute.xlu1 %1025 }
 0x183   : > { %1814 = vmatmul.mubr.msk.f32.vlgmr.msra.gmra.mxu0 %vm389_vm8, %v2286_v41  ;;  %1829 = vmatprep.subr.mxu0 %v1937_v4  ;;  %v1041_v1 = vsel %vm384_vm7, %v1023_v58, %v1026_v52 }
 0x184   : > { %1830 = vmatpush3.msk.msra.mxu0 %vm384_vm7, %v2297_v44  ;;  %1839 = vmatprep.mubr.msk.f32.mxu0 %vm1940_vm6, %v1937_v4 }
 0x185   : > { %1831 = vmatprep.subr.mxu0 %v1937_v4 }
 0x186   : > { %1832 = vmatpush3.msra.mxu0 %v2310_v47  ;;  %v1326_v59 = vpop.permute.xlu1 %1325 }
 0x187   : > { %1833 = vmatprep.subr.mxu0 %v1937_v4 }
 0x188   : > { %1834 = vmatpush3.msra.mxu0 %v2323_v48 }
 0x189   : > { %1835 = vmatprep.subr.mxu0 %v1937_v4 }
 0x18a   : > { %1836 = vmatpush3.msra.mxu0 %v2334_v51  ;;  %v1323_v2 = vpop.permute.xlu1 %1322 }
 0x18b   : > { %1837 = vmatprep.subr.mxu0 %v1937_v4 }
 0x18c   : > { %1838 = vmatpush3.msra.mxu0 %v2370_v33 }
 0x18d   : > { %1855 = vmatprep.subr.mxu0 %v1937_v4 }
 0x18e   : > { %v1200_v10 = vpop.permute.xlu1 %1199 }
 0x18f   : > { %v1226_v13 = vsel %vm384_vm7, %v1197_v22, %v1200_v10 }
 0x192   : > { %v1306_v18 = vpop.permute.xlu1 %1305 }
 0x22f   : > { %v2480_v20 = vpop.f32.mrf.mxu0 }
 0x231   : > { %v1763_v46 = vpop.f32.mrf.mxu0 }
 0x239   : > { %v842_v60 = vpop.f32.mrf.mxu0 }
 0x23a   : > { %v846_v62 = vmax.f32 %v747_v26, %v842_v60 }
 0x23b   : > { %v1789_v63 = vpop.f32.mrf.mxu0 }
 0x23c   : > { %1801 = vmatmul.mubr.msk.f32.vlgmr.msra.gmra.mxu1 %vm389_vm8, %v846_v62 }
 0x23d   : > { %1817 = vmatpush3.msk.msra.mxu1 %vm384_vm7, %v2419_v38  ;;  %1826 = vmatprep.mubr.msk.f32.mxu1 %vm1940_vm6, %v1937_v4 }
 0x23e   : > { %1818 = vmatprep.subr.mxu1 %v1937_v4 }
 0x23f   : > { %1819 = vmatpush3.msra.mxu1 %v2489_v0 }
 0x240   : > { %1820 = vmatprep.subr.mxu1 %v1937_v4 }
 0x241   : > { %1821 = vmatpush3.msra.mxu1 %v1041_v1 }
 0x242   : > { %1822 = vmatprep.subr.mxu1 %v1937_v4 }
 0x243   : > { %1823 = vmatpush3.msra.mxu1 %v1040_v21  ;;  %v1016_v12 = vpop.f32.mrf.mxu0 }
 0x244   : > { %1824 = vmatprep.subr.mxu1 %v1937_v4 }
 0x245   : > { %1825 = vmatpush3.msra.mxu1 %v2431_v50 }
 0x246   : > { %1827 = vmatmul.mubr.msk.f32.vlgmr.msra.gmra.mxu1 %vm389_vm8, %v2286_v41  ;;  %1842 = vmatprep.subr.mxu1 %v1937_v4 }
 0x247   : > { %1843 = vmatpush3.msk.msra.mxu1 %vm384_vm7, %v1224_v61  ;;  %1852 = vmatprep.mubr.msk.f32.mxu1 %vm1940_vm6, %v1937_v4 }
 0x248   : > { %1844 = vmatprep.subr.mxu1 %v1937_v4 }
 0x249   : > { %1845 = vmatpush3.msra.mxu1 %v1227_v30 }
 0x24a   : > { %1846 = vmatprep.subr.mxu1 %v1937_v4 }
 0x24b   : > { %1847 = vmatpush3.msra.mxu1 %v1226_v13 }
 0x24c   : > { %1848 = vmatprep.subr.mxu1 %v1937_v4 }
 0x24d   : > { %1849 = vmatpush3.msra.mxu1 %v1225_v45 }
 0x24e   : > { %1850 = vmatprep.subr.mxu1 %v1937_v4 }
 0x24f   : > { %1851 = vmatpush3.msra.mxu1 %v2445_v57 }
 0x250   : > { %1853 = vmatmul.mubr.msk.f32.vlgmr.msra.gmra.mxu1 %vm389_vm8, %v2286_v41  ;;  %1868 = vmatprep.subr.mxu1 %v1937_v4 }
 0x251   : > { %1869 = vmatpush3.msk.msra.mxu1 %vm384_vm7, %v2297_v44  ;;  %1878 = vmatprep.mubr.msk.f32.mxu1 %vm1940_vm6, %v1937_v4  ;;  %v1815_v44 = vpop.f32.mrf.mxu0 }
 0x252   : > { %1870 = vmatprep.subr.mxu1 %v1937_v4 }
 0x253   : > { %1871 = vmatpush3.msra.mxu1 %v2310_v47 }
 0x254   : > { %1872 = vmatprep.subr.mxu1 %v1937_v4 }
 0x255   : > { %1873 = vmatpush3.msra.mxu1 %v2323_v48  ;;  %v1303_v48 = vpop.permute.xlu0 %1302 }
 0x256   : > { %1874 = vmatprep.subr.mxu1 %v1937_v4 }
 0x257   : > { %1875 = vmatpush3.msra.mxu1 %v2334_v51  ;;  %v1329_v51 = vsel %vm384_vm7, %v2394_v23, %v1323_v2 }
 0x258   : > { %1876 = vmatprep.subr.mxu1 %v1937_v4 }
 0x259   : > { %1877 = vmatpush3.msra.mxu1 %v2370_v33  ;;  %v1328_v33 = vsel %vm384_vm7, %v1303_v48, %v1306_v18 }
 0x2fc   : > { %v916_v31 = vpop.f32.mrf.mxu1 }
 0x2fd   : > { %921 = vrot.lane.b32.xlu0 %v916_v31, %s1941_s20 }
 0x2fe   : > { %v1802_v32 = vpop.f32.mrf.mxu1 }
 0x306   : > { %v1111_v47 = vpop.f32.mrf.mxu1 }
 0x307   : > { %v1115_v16 = vmax.f32 %v1016_v12, %v1111_v47 }
 0x308   : > { %v1828_v9 = vpop.f32.mrf.mxu1 }
 0x309   : > { %1840 = vmatmul.mubr.msk.f32.vlgmr.msra.gmra.mxu0 %vm389_vm8, %v1115_v16 }
 0x30a   : > { %1856 = vmatpush3.msk.msra.mxu0 %vm384_vm7, %v1326_v59  ;;  %1865 = vmatprep.mubr.msk.f32.mxu0 %vm1940_vm6, %v1937_v4 }
 0x30b   : > { %1857 = vmatprep.subr.mxu0 %v1937_v4 }
 0x30c   : > { %1858 = vmatpush3.msra.mxu0 %v1329_v51 }
 0x30d   : > { %1859 = vmatprep.subr.mxu0 %v1937_v4 }
 0x30e   : > { %1860 = vmatpush3.msra.mxu0 %v1328_v33 }
 0x30f   : > { %1861 = vmatprep.subr.mxu0 %v1937_v4 }
 0x310   : > { %1862 = vmatpush3.msra.mxu0 %v1327_v5  ;;  %v1296_v6 = vpop.f32.mrf.mxu1 }
 0x311   : > { %1863 = vmatprep.subr.mxu0 %v1937_v4 }
 0x312   : > { %1864 = vmatpush3.msra.mxu0 %v2489_v0  ;;  %v1854_v7 = vpop.f32.mrf.mxu1 }
 0x313   : > { %1866 = vmatmul.mubr.msk.f32.vlgmr.msra.gmra.mxu0 %vm389_vm8, %v2286_v41 }
 0x36f   : > { %v922_v29 = vpop.permute.xlu0 %921 }
 0x370   : > { %v924_v35 = vmax.f32 %v916_v31, %v922_v29 }
 0x3c9   : > { %v1185_v8 = vpop.f32.mrf.mxu0 }
 0x3ca   : > { %1190 = vrot.lane.b32.xlu1 %v1185_v8, %s1941_s20 }
 0x3cb   : > { %v1841_v14 = vpop.f32.mrf.mxu0 }
 0x3ce   : > { %652 = vrot.lane.b32.xlu1 %v2480_v20, %s1941_s20 }
 0x3d3   : > { %v1398_v15 = vpop.f32.mrf.mxu0 }
 0x3d4   : > { %v1402_v23 = vmax.f32 %v1296_v6, %v1398_v15 }
 0x3d5   : > { %v1867_v24 = vpop.f32.mrf.mxu0 }
 0x3d6   : > { %1879 = vmatmul.mubr.msk.f32.vlgmr.msra.gmra.mxu1 %vm389_vm8, %v1402_v23 }
 0x43c   : > { %v1191_v4 = vpop.permute.xlu1 %1190 }
 0x43d   : > { %v1193_v28 = vmax.f32 %v1185_v8, %v1191_v4 }
 0x43f   : > { %1486 = vrot.lane.b32.xlu1 %v1193_v28, %s1942_s21 }
 0x440   : > { %v653_v38 = vpop.permute.xlu1 %652 }
 0x441   : > { %v655_v40 = vmax.f32 %v2480_v20, %v653_v38 }
 0x496   : > { %v1472_v41 = vpop.f32.mrf.mxu1 }
 0x497   : > { %1477 = vrot.lane.b32.xlu0 %v1472_v41, %s1941_s20 }
 0x498   : > { %v1880_v34 = vpop.f32.mrf.mxu1 }
 0x49b   : > { %1482 = vrot.lane.b32.xlu0 %v924_v35, %s1943_s9 }
 0x4b1   : > { %v1487_v25 = vpop.permute.xlu1 %1486 }
 0x509   : > { %v1478_v36 = vpop.permute.xlu0 %1477 }
 0x50a   : > { %v1480_v37 = vmax.f32 %v1472_v41, %v1478_v36 }
 0x50c   : > { %1490 = vrot.lane.b32.xlu0 %v1480_v37, %s1944_s10 }
 0x50d   : > { %v1483_v39 = vpop.permute.xlu0 %1482 }
 0x50e   : > { %v1494_v42 = vsel %vm1493_vm9, %v655_v40, %v1483_v39 }
 0x50f   : > { %v1496_v43 = vsel %vm1495_vm10, %v1494_v42, %v1487_v25 }
 0x57e   : > { %v1491_v50 = vpop.permute.xlu0 %1490 }
 0x57f   : > { %v1498_v53 = vsel %vm1497_vm11, %v1496_v43, %v1491_v50 }
 0x580   : > { %v1501_v54 = vsel %vm1499_vm12, %v1498_v53, 0.0  ;;  %1500 = vst.msk [vmem:[%s296_s13] sm:$0xff] %vm1499_vm12, %v1498_v53  ;;  %v1504_v55 = vmul.f32 %v1498_v53, %v1498_v53 }
 0x581   : > { %1502 = vadd.xlane.f32.xlu1 %v1501_v54 }
 0x582   : > { %v1505_v56 = vsel %vm1499_vm12, %v1504_v55, 0.0 }
 0x583   : > { %1506 = vadd.xlane.f32.xlu0 %v1505_v56 }
 0x60a   : > { %v1503_v3 = vpop.xlane.xlu1 %1502 }
 0x60c   : > { %v1507_v49 = vpop.xlane.xlu0 %1506 }
 0x60d   : > { %v1509_v57 = vsel %vm1508_vm13, %v1503_v3, %v1507_v49 }
 0x60e   : > { %1511 = vst.msk [vmem:[%s300_s16] sm:$0xff] %vm1510_vm14, %v1509_v57 }
 0x60f PF: > { %p13_p9 = scmp.ge.s32.totalorder %s1992_s22, 4   ;;  %s2581_s18 = smov %s1931_s19 }
 0x610   : > { %s2582_s19 = smov %s2001_s25  ;;  %s2583_s20 = smov %s1992_s22 }
 0x611   :  { %15 = sbr.rel (!%p13_p9) target bundleno = 2 (0x2), region = 124 }

</bundles_post_ra>
